<compile_context>
chip_gen: v6e
topology: v6e:2x2x1
jax: 0.10.0
libtpu: 0.0.40
codegen_flags: <defaults>
</compile_context>

<pallas_src>
import functools
import math

import jax
import jax.numpy as jnp
from jax import lax
from jax.experimental import pallas as pl
from jax.experimental.pallas import tpu as pltpu


# --------------------------------------------------------------------------- #
# Kernel 1: multi-head self-attention on one dense (S, H) batch slab.
# --------------------------------------------------------------------------- #
def _attention_kernel(x_ref, mask_ref, wq_ref, bq_ref, wk_ref, bk_ref,
                      wv_ref, bv_ref, o_ref, *, num_heads, scale):
    x = x_ref[0]           # (S, H) f32
    m = mask_ref[0]        # (1, S) f32 ; key positions with m < 0.5 are masked out

    def proj(w_ref, b_ref):
        # Linear + ReLU (the module applies F.relu after each of q/k/v projections).
        return jnp.maximum(
            jnp.dot(x, w_ref[...], preferred_element_type=jnp.float32) + b_ref[...],
            0.0)

    q = proj(wq_ref, bq_ref)
    k = proj(wk_ref, bk_ref)
    v = proj(wv_ref, bv_ref)

    d = q.shape[-1] // num_heads
    head_outs = []
    for h in range(num_heads):                       # static unrolled loop over heads
        sl = slice(h * d, (h + 1) * d)
        qh, kh, vh = q[:, sl], k[:, sl], v[:, sl]    # (S, d)
        s = lax.dot_general(qh, kh, (((1,), (1,)), ((), ())),
                            preferred_element_type=jnp.float32) * scale   # (S, S)
        s = jnp.where(m < 0.5, -1e9, s)              # mask key positions (broadcast over queries)
        s = s - jnp.max(s, axis=-1, keepdims=True)
        p = jnp.exp(s)
        p = p / jnp.sum(p, axis=-1, keepdims=True)   # softmax over keys
        head_outs.append(jnp.dot(p, vh, preferred_element_type=jnp.float32))

    # Re-merge heads along the feature axis (matches _reshape_from_batches).
    o_ref[0] = jnp.concatenate(head_outs, axis=-1).astype(o_ref.dtype)


# --------------------------------------------------------------------------- #
# Kernel 2: out-projection + GELU + residual + LayerNorm on a (TILE, H) node slab.
# --------------------------------------------------------------------------- #
def _out_block_kernel(y_ref, res_ref, wo_ref, bo_ref, g_ref, b_ref, o_ref, *, eps):
    h = jnp.dot(y_ref[...], wo_ref[...],
                preferred_element_type=jnp.float32) + bo_ref[...]
    # GELU (tanh approximation, == nn.GELU(approximate='tanh')).
    # TODO(synk): PyTorch nn.GELU() default is the exact erf form; the tanh approx is
    # used here for guaranteed Mosaic lowering (max abs diff ~3e-3 on the raw GELU).
    c = 0.7978845608028654  # sqrt(2/pi)
    h = 0.5 * h * (1.0 + jnp.tanh(c * (h + 0.044715 * h * h * h)))
    h = h + res_ref[...]                                         # residual add
    mean = jnp.mean(h, axis=-1, keepdims=True)
    var = jnp.mean(jnp.square(h - mean), axis=-1, keepdims=True)
    o_ref[...] = ((h - mean) * lax.rsqrt(var + eps) * g_ref[...]
                  + b_ref[...]).astype(o_ref.dtype)


# --------------------------------------------------------------------------- #
# Wrapper
# --------------------------------------------------------------------------- #
@functools.partial(
    jax.jit,
    static_argnames=("batch_size", "max_seq_len", "num_heads", "node_tile"))
def transformer_layer(flat_batch, flat_pos, flat_mask, node_emb, params, *,
                      batch_size, max_seq_len, num_heads, node_tile=128):
    """Pallas implementation of TransformerLayer.forward (inference).

    flat_batch, flat_pos: (N,) int32 — the advanced-index pair `flat_index`
        mapping each node to (graph, position-in-graph).
    flat_mask: (B, S) float — 1.0 where a node exists (attention key mask).
    node_emb:  (N, H) float32 per-node embeddings.
    returns:   (N, H) float32.
    """
    hidden = node_emb.shape[-1]
    head_dim = hidden // num_heads
    scale = 1.0 / math.sqrt(head_dim)

    # ---- scatter nodes into the dense (B, S, H) layout ----------------------
    # TODO(synk): the data-dependent scatter `node_flat[flat_index] = node_emb`
    # has no static BlockSpec equivalent; done with JAX .at[] in the wrapper.
    node_flat = jnp.zeros((batch_size, max_seq_len, hidden), node_emb.dtype)
    node_flat = node_flat.at[flat_batch, flat_pos].set(node_emb)

    mask3 = flat_mask.astype(jnp.float32).reshape(batch_size, 1, max_seq_len)

    attn_out = pl.pallas_call(
        functools.partial(_attention_kernel, num_heads=num_heads, scale=scale),
        out_shape=jax.ShapeDtypeStruct((batch_size, max_seq_len, hidden),
                                       node_emb.dtype),
        grid_spec=pltpu.PrefetchScalarGridSpec(
            num_scalar_prefetch=0,
            grid=(batch_size,),
            in_specs=[
                pl.BlockSpec((1, max_seq_len, hidden), lambda b: (b, 0, 0)),  # x
                pl.BlockSpec((1, 1, max_seq_len), lambda b: (b, 0, 0)),       # mask
                pl.BlockSpec((hidden, hidden), lambda b: (0, 0)),             # Wq
                pl.BlockSpec((1, hidden), lambda b: (0, 0)),                  # bq
                pl.BlockSpec((hidden, hidden), lambda b: (0, 0)),             # Wk
                pl.BlockSpec((1, hidden), lambda b: (0, 0)),                  # bk
                pl.BlockSpec((hidden, hidden), lambda b: (0, 0)),             # Wv
                pl.BlockSpec((1, hidden), lambda b: (0, 0)),                  # bv
            ],
            out_specs=pl.BlockSpec((1, max_seq_len, hidden), lambda b: (b, 0, 0)),
        ),
        compiler_params=pltpu.CompilerParams(dimension_semantics=("parallel",)),
    )(node_flat, mask3,
      params["wq"], params["bq"], params["wk"], params["bk"],
      params["wv"], params["bv"])

    # ---- gather the per-node rows back ---------------------------------------
    # TODO(synk): data-dependent gather done with JAX advanced indexing.
    gathered = attn_out[flat_batch, flat_pos]                      # (N, H)

    n = node_emb.shape[0]
    n_pad = pl.cdiv(n, node_tile) * node_tile
    pad = n_pad - n
    gathered_p = jnp.pad(gathered, ((0, pad), (0, 0)))
    node_emb_p = jnp.pad(node_emb, ((0, pad), (0, 0)))

    out = pl.pallas_call(
        functools.partial(_out_block_kernel, eps=1e-5),
        out_shape=jax.ShapeDtypeStruct((n_pad, hidden), node_emb.dtype),
        grid_spec=pltpu.PrefetchScalarGridSpec(
            num_scalar_prefetch=0,
            grid=(n_pad // node_tile,),
            in_specs=[
                pl.BlockSpec((node_tile, hidden), lambda i: (i, 0)),   # gathered rows
                pl.BlockSpec((node_tile, hidden), lambda i: (i, 0)),   # residual (node_emb)
                pl.BlockSpec((hidden, hidden), lambda i: (0, 0)),      # Wo
                pl.BlockSpec((1, hidden), lambda i: (0, 0)),           # bo
                pl.BlockSpec((1, hidden), lambda i: (0, 0)),           # gamma
                pl.BlockSpec((1, hidden), lambda i: (0, 0)),           # beta
            ],
            out_specs=pl.BlockSpec((node_tile, hidden), lambda i: (i, 0)),
        ),
        compiler_params=pltpu.CompilerParams(dimension_semantics=("parallel",)),
    )(gathered_p, node_emb_p,
      params["wo"], params["bo"], params["gamma"], params["beta"])

    return out[:n]


# --------------------------------------------------------------------------- #
# Pure-JAX reference (mirrors the PyTorch module; dropouts identity, tanh GELU).
# --------------------------------------------------------------------------- #
def _gelu_tanh(x):
    c = 0.7978845608028654
    return 0.5 * x * (1.0 + jnp.tanh(c * (x + 0.044715 * x * x * x)))


def _reference(flat_batch, flat_pos, flat_mask, node_emb, p,
               batch_size, max_seq_len, num_heads):
    hidden = node_emb.shape[-1]
    d = hidden // num_heads

    node_flat = jnp.zeros((batch_size, max_seq_len, hidden), node_emb.dtype)
    node_flat = node_flat.at[flat_batch, flat_pos].set(node_emb)

    def lin(x, w, b):
        return x @ w + b

    q = jax.nn.relu(lin(node_flat, p["wq"], p["bq"]))
    k = jax.nn.relu(lin(node_flat, p["wk"], p["bk"]))
    v = jax.nn.relu(lin(node_flat, p["wv"], p["bv"]))

    def to_batches(x):
        return (x.reshape(batch_size, max_seq_len, num_heads, d)
                 .transpose(0, 2, 1, 3)
                 .reshape(batch_size * num_heads, max_seq_len, d))

    qb, kb, vb = to_batches(q), to_batches(k), to_batches(v)
    scores = jnp.einsum("bqd,bkd->bqk", qb, kb) / math.sqrt(d)
    mask = jnp.repeat(flat_mask[:, None, :], num_heads, axis=1)
    mask = mask.reshape(batch_size * num_heads, 1, max_seq_len)
    scores = jnp.where(mask < 0.5, -1e9, scores)
    attn = jax.nn.softmax(scores, axis=-1)
    y = jnp.einsum("bqk,bkd->bqd", attn, vb)
    y = (y.reshape(batch_size, num_heads, max_seq_len, d)
          .transpose(0, 2, 1, 3)
          .reshape(batch_size, max_seq_len, hidden))

    g = y[flat_batch, flat_pos]
    h = _gelu_tanh(lin(g, p["wo"], p["bo"])) + node_emb
    mean = h.mean(-1, keepdims=True)
    var = jnp.mean(jnp.square(h - mean), -1, keepdims=True)
    return (h - mean) / jnp.sqrt(var + 1e-5) * p["gamma"] + p["beta"]


# --------------------------------------------------------------------------- #
if __name__ == "__main__":
    key = jax.random.PRNGKey(0)
    ks = jax.random.split(key, 12)

    # config = {'hidden_size': 32, 'num_attention_heads': 4, 'dropout_layer_out': 0.1}
    batch_size, max_seq_len = 2, 8
    hidden, num_heads = 32, 4
    nodes_per_graph = (5, 7)
    num_nodes = sum(nodes_per_graph)

    flat_batch = jnp.asarray(
        sum(([g] * n for g, n in enumerate(nodes_per_graph)), []), dtype=jnp.int32)
    flat_pos = jnp.asarray(
        sum((list(range(n)) for n in nodes_per_graph), []), dtype=jnp.int32)
    flat_mask = jnp.zeros((batch_size, max_seq_len), jnp.float32
                          ).at[flat_batch, flat_pos].set(1.0)

    node_emb = jax.random.normal(ks[0], (num_nodes, hidden), jnp.float32)

    def lin_init(kw, kb, fan_in, shape_w):
        bound = 1.0 / math.sqrt(fan_in)
        w = jax.random.uniform(kw, shape_w, jnp.float32, -bound, bound)
        b = jax.random.uniform(kb, (1, shape_w[-1]), jnp.float32, -bound, bound)
        return w, b

    wq, bq = lin_init(ks[1], ks[2], hidden, (hidden, hidden))
    wk, bk = lin_init(ks[3], ks[4], hidden, (hidden, hidden))
    wv, bv = lin_init(ks[5], ks[6], hidden, (hidden, hidden))
    wo, bo = lin_init(ks[7], ks[8], hidden, (hidden, hidden))
    gamma = 1.0 + 0.1 * jax.random.normal(ks[9], (1, hidden), jnp.float32)
    beta = 0.1 * jax.random.normal(ks[10], (1, hidden), jnp.float32)

    params = dict(wq=wq, bq=bq, wk=wk, bk=bk, wv=wv, bv=bv,
                  wo=wo, bo=bo, gamma=gamma, beta=beta)

    out = transformer_layer(flat_batch, flat_pos, flat_mask, node_emb, params,
                            batch_size=batch_size, max_seq_len=max_seq_len,
                            num_heads=num_heads)
    out = jax.block_until_ready(out)

    ref = _reference(flat_batch, flat_pos, flat_mask, node_emb, params,
                     batch_size, max_seq_len, num_heads)

    assert out.shape == (num_nodes, hidden), out.shape
    max_err = float(jnp.max(jnp.abs(out - ref)))
    assert jnp.allclose(out, ref, atol=2e-4, rtol=2e-4), f"mismatch, max err {max_err}"

    print("KERNEL_OK")
</pallas_src>

<mosaic_0001>
module attributes {stable_mosaic.version = 11 : i64} {
  func.func @_attention_kernel(%arg0: i32, %arg1: memref<1x8x32xf32, #tpu.memory_space<vmem>>, %arg2: memref<1x1x8xf32, #tpu.memory_space<vmem>>, %arg3: memref<32x32xf32, #tpu.memory_space<vmem>>, %arg4: memref<1x32xf32, #tpu.memory_space<vmem>>, %arg5: memref<32x32xf32, #tpu.memory_space<vmem>>, %arg6: memref<1x32xf32, #tpu.memory_space<vmem>>, %arg7: memref<32x32xf32, #tpu.memory_space<vmem>>, %arg8: memref<1x32xf32, #tpu.memory_space<vmem>>, %arg9: memref<1x8x32xf32, #tpu.memory_space<vmem>>) attributes {dimension_semantics = [#tpu.dimension_semantics<parallel>], iteration_bounds = array<i64: 2>, scalar_prefetch = 0 : i64, scratch_operands = 0 : i64, tpu.core_type = #tpu.core_type<tc>, window_params = [{transform_indices = @transform_0, window_bounds = array<i64: 1, 8, 32>}, {transform_indices = @transform_1, window_bounds = array<i64: 1, 1, 8>}, {pipeline_mode = #tpu.pipeline_mode<synchronous>, transform_indices = @transform_2, window_bounds = array<i64: 32, 32>}, {pipeline_mode = #tpu.pipeline_mode<synchronous>, transform_indices = @transform_3, window_bounds = array<i64: 1, 32>}, {pipeline_mode = #tpu.pipeline_mode<synchronous>, transform_indices = @transform_4, window_bounds = array<i64: 32, 32>}, {pipeline_mode = #tpu.pipeline_mode<synchronous>, transform_indices = @transform_5, window_bounds = array<i64: 1, 32>}, {pipeline_mode = #tpu.pipeline_mode<synchronous>, transform_indices = @transform_6, window_bounds = array<i64: 32, 32>}, {pipeline_mode = #tpu.pipeline_mode<synchronous>, transform_indices = @transform_7, window_bounds = array<i64: 1, 32>}, {transform_indices = @transform_8, window_bounds = array<i64: 1, 8, 32>}]} {
    %c0 = arith.constant 0 : index
    %c0_0 = arith.constant 0 : index
    %c0_1 = arith.constant 0 : index
    %0 = vector.load %arg1[%c0, %c0_0, %c0_1] : memref<1x8x32xf32, #tpu.memory_space<vmem>>, vector<1x8x32xf32>
    %1 = vector.shape_cast %0 : vector<1x8x32xf32> to vector<8x32xf32>
    %c0_2 = arith.constant 0 : index
    %c0_3 = arith.constant 0 : index
    %c0_4 = arith.constant 0 : index
    %2 = vector.load %arg2[%c0_2, %c0_3, %c0_4] : memref<1x1x8xf32, #tpu.memory_space<vmem>>, vector<1x1x8xf32>
    %3 = vector.shape_cast %2 : vector<1x1x8xf32> to vector<1x8xf32>
    %c0_5 = arith.constant 0 : index
    %c0_6 = arith.constant 0 : index
    %4 = vector.load %arg3[%c0_5, %c0_6] : memref<32x32xf32, #tpu.memory_space<vmem>>, vector<32x32xf32>
    %cst = arith.constant dense<0.000000e+00> : vector<8x32xf32>
    %5 = tpu.matmul %1, %4, %cst {dimension_numbers = #tpu.dot_dimension_numbers<[1], [0], [0], [1], [0, 0, 1, 1], [], []>} : vector<8x32xf32>, vector<32x32xf32>, vector<8x32xf32> -> vector<8x32xf32>
    %c0_7 = arith.constant 0 : index
    %c0_8 = arith.constant 0 : index
    %6 = vector.load %arg4[%c0_7, %c0_8] : memref<1x32xf32, #tpu.memory_space<vmem>>, vector<1x32xf32>
    %7 = vector.broadcast %6 : vector<1x32xf32> to vector<8x32xf32>
    %8 = arith.addf %5, %7 : vector<8x32xf32>
    %cst_9 = arith.constant 0.000000e+00 : f32
    %9 = vector.broadcast %cst_9 : f32 to vector<8x32xf32>
    %10 = arith.maximumf %8, %9 : vector<8x32xf32>
    %c0_10 = arith.constant 0 : index
    %c0_11 = arith.constant 0 : index
    %11 = vector.load %arg5[%c0_10, %c0_11] : memref<32x32xf32, #tpu.memory_space<vmem>>, vector<32x32xf32>
    %cst_12 = arith.constant dense<0.000000e+00> : vector<8x32xf32>
    %12 = tpu.matmul %1, %11, %cst_12 {dimension_numbers = #tpu.dot_dimension_numbers<[1], [0], [0], [1], [0, 0, 1, 1], [], []>} : vector<8x32xf32>, vector<32x32xf32>, vector<8x32xf32> -> vector<8x32xf32>
    %c0_13 = arith.constant 0 : index
    %c0_14 = arith.constant 0 : index
    %13 = vector.load %arg6[%c0_13, %c0_14] : memref<1x32xf32, #tpu.memory_space<vmem>>, vector<1x32xf32>
    %14 = vector.broadcast %13 : vector<1x32xf32> to vector<8x32xf32>
    %15 = arith.addf %12, %14 : vector<8x32xf32>
    %cst_15 = arith.constant 0.000000e+00 : f32
    %16 = vector.broadcast %cst_15 : f32 to vector<8x32xf32>
    %17 = arith.maximumf %15, %16 : vector<8x32xf32>
    %c0_16 = arith.constant 0 : index
    %c0_17 = arith.constant 0 : index
    %18 = vector.load %arg7[%c0_16, %c0_17] : memref<32x32xf32, #tpu.memory_space<vmem>>, vector<32x32xf32>
    %cst_18 = arith.constant dense<0.000000e+00> : vector<8x32xf32>
    %19 = tpu.matmul %1, %18, %cst_18 {dimension_numbers = #tpu.dot_dimension_numbers<[1], [0], [0], [1], [0, 0, 1, 1], [], []>} : vector<8x32xf32>, vector<32x32xf32>, vector<8x32xf32> -> vector<8x32xf32>
    %c0_19 = arith.constant 0 : index
    %c0_20 = arith.constant 0 : index
    %20 = vector.load %arg8[%c0_19, %c0_20] : memref<1x32xf32, #tpu.memory_space<vmem>>, vector<1x32xf32>
    %21 = vector.broadcast %20 : vector<1x32xf32> to vector<8x32xf32>
    %22 = arith.addf %19, %21 : vector<8x32xf32>
    %cst_21 = arith.constant 0.000000e+00 : f32
    %23 = vector.broadcast %cst_21 : f32 to vector<8x32xf32>
    %24 = arith.maximumf %22, %23 : vector<8x32xf32>
    %25 = vector.extract_strided_slice %10 {offsets = [0, 0], sizes = [8, 8], strides = [1, 1]} : vector<8x32xf32> to vector<8x8xf32>
    %26 = vector.extract_strided_slice %17 {offsets = [0, 0], sizes = [8, 8], strides = [1, 1]} : vector<8x32xf32> to vector<8x8xf32>
    %27 = vector.extract_strided_slice %24 {offsets = [0, 0], sizes = [8, 8], strides = [1, 1]} : vector<8x32xf32> to vector<8x8xf32>
    %cst_22 = arith.constant dense<0.000000e+00> : vector<8x8xf32>
    %28 = tpu.matmul %25, %26, %cst_22 {dimension_numbers = #tpu.dot_dimension_numbers<[1], [1], [0], [0], [0, 0, 1, 0], [], []>} : vector<8x8xf32>, vector<8x8xf32>, vector<8x8xf32> -> vector<8x8xf32>
    %cst_23 = arith.constant 0.353553385 : f32
    %29 = vector.broadcast %cst_23 : f32 to vector<8x8xf32>
    %30 = arith.mulf %28, %29 : vector<8x8xf32>
    %cst_24 = arith.constant 5.000000e-01 : f32
    %31 = vector.broadcast %cst_24 : f32 to vector<1x8xf32>
    %32 = arith.cmpf olt, %3, %31 : vector<1x8xf32>
    %cst_25 = arith.constant -1.000000e+09 : f32
    %33 = vector.shape_cast %32 : vector<1x8xi1> to vector<1x8xi1>
    %34 = vector.broadcast %33 : vector<1x8xi1> to vector<8x8xi1>
    %35 = vector.broadcast %cst_25 : f32 to vector<8x8xf32>
    %36 = arith.select %34, %35, %30 : vector<8x8xi1>, vector<8x8xf32>
    %cst_26 = arith.constant dense<0xFF800000> : vector<8xf32>
    %37 = vector.multi_reduction <maximumf>, %36, %cst_26 [1] : vector<8x8xf32> to vector<8xf32>
    %38 = vector.shape_cast %37 : vector<8xf32> to vector<8x1xf32>
    %39 = vector.broadcast %38 : vector<8x1xf32> to vector<8x8xf32>
    %40 = arith.subf %36, %39 : vector<8x8xf32>
    %41 = math.exp %40 : vector<8x8xf32>
    %cst_27 = arith.constant dense<0.000000e+00> : vector<8xf32>
    %42 = vector.multi_reduction <add>, %41, %cst_27 [1] : vector<8x8xf32> to vector<8xf32>
    %43 = vector.shape_cast %42 : vector<8xf32> to vector<8x1xf32>
    %44 = vector.broadcast %43 : vector<8x1xf32> to vector<8x8xf32>
    %45 = arith.divf %41, %44 : vector<8x8xf32>
    %cst_28 = arith.constant dense<0.000000e+00> : vector<8x8xf32>
    %46 = tpu.matmul %45, %27, %cst_28 {dimension_numbers = #tpu.dot_dimension_numbers<[1], [0], [0], [1], [0, 0, 1, 1], [], []>} : vector<8x8xf32>, vector<8x8xf32>, vector<8x8xf32> -> vector<8x8xf32>
    %47 = vector.extract_strided_slice %10 {offsets = [0, 8], sizes = [8, 8], strides = [1, 1]} : vector<8x32xf32> to vector<8x8xf32>
    %48 = vector.extract_strided_slice %17 {offsets = [0, 8], sizes = [8, 8], strides = [1, 1]} : vector<8x32xf32> to vector<8x8xf32>
    %49 = vector.extract_strided_slice %24 {offsets = [0, 8], sizes = [8, 8], strides = [1, 1]} : vector<8x32xf32> to vector<8x8xf32>
    %cst_29 = arith.constant dense<0.000000e+00> : vector<8x8xf32>
    %50 = tpu.matmul %47, %48, %cst_29 {dimension_numbers = #tpu.dot_dimension_numbers<[1], [1], [0], [0], [0, 0, 1, 0], [], []>} : vector<8x8xf32>, vector<8x8xf32>, vector<8x8xf32> -> vector<8x8xf32>
    %cst_30 = arith.constant 0.353553385 : f32
    %51 = vector.broadcast %cst_30 : f32 to vector<8x8xf32>
    %52 = arith.mulf %50, %51 : vector<8x8xf32>
    %cst_31 = arith.constant 5.000000e-01 : f32
    %53 = vector.broadcast %cst_31 : f32 to vector<1x8xf32>
    %54 = arith.cmpf olt, %3, %53 : vector<1x8xf32>
    %cst_32 = arith.constant -1.000000e+09 : f32
    %55 = vector.shape_cast %54 : vector<1x8xi1> to vector<1x8xi1>
    %56 = vector.broadcast %55 : vector<1x8xi1> to vector<8x8xi1>
    %57 = vector.broadcast %cst_32 : f32 to vector<8x8xf32>
    %58 = arith.select %56, %57, %52 : vector<8x8xi1>, vector<8x8xf32>
    %cst_33 = arith.constant dense<0xFF800000> : vector<8xf32>
    %59 = vector.multi_reduction <maximumf>, %58, %cst_33 [1] : vector<8x8xf32> to vector<8xf32>
    %60 = vector.shape_cast %59 : vector<8xf32> to vector<8x1xf32>
    %61 = vector.broadcast %60 : vector<8x1xf32> to vector<8x8xf32>
    %62 = arith.subf %58, %61 : vector<8x8xf32>
    %63 = math.exp %62 : vector<8x8xf32>
    %cst_34 = arith.constant dense<0.000000e+00> : vector<8xf32>
    %64 = vector.multi_reduction <add>, %63, %cst_34 [1] : vector<8x8xf32> to vector<8xf32>
    %65 = vector.shape_cast %64 : vector<8xf32> to vector<8x1xf32>
    %66 = vector.broadcast %65 : vector<8x1xf32> to vector<8x8xf32>
    %67 = arith.divf %63, %66 : vector<8x8xf32>
    %cst_35 = arith.constant dense<0.000000e+00> : vector<8x8xf32>
    %68 = tpu.matmul %67, %49, %cst_35 {dimension_numbers = #tpu.dot_dimension_numbers<[1], [0], [0], [1], [0, 0, 1, 1], [], []>} : vector<8x8xf32>, vector<8x8xf32>, vector<8x8xf32> -> vector<8x8xf32>
    %69 = vector.extract_strided_slice %10 {offsets = [0, 16], sizes = [8, 8], strides = [1, 1]} : vector<8x32xf32> to vector<8x8xf32>
    %70 = vector.extract_strided_slice %17 {offsets = [0, 16], sizes = [8, 8], strides = [1, 1]} : vector<8x32xf32> to vector<8x8xf32>
    %71 = vector.extract_strided_slice %24 {offsets = [0, 16], sizes = [8, 8], strides = [1, 1]} : vector<8x32xf32> to vector<8x8xf32>
    %cst_36 = arith.constant dense<0.000000e+00> : vector<8x8xf32>
    %72 = tpu.matmul %69, %70, %cst_36 {dimension_numbers = #tpu.dot_dimension_numbers<[1], [1], [0], [0], [0, 0, 1, 0], [], []>} : vector<8x8xf32>, vector<8x8xf32>, vector<8x8xf32> -> vector<8x8xf32>
    %cst_37 = arith.constant 0.353553385 : f32
    %73 = vector.broadcast %cst_37 : f32 to vector<8x8xf32>
    %74 = arith.mulf %72, %73 : vector<8x8xf32>
    %cst_38 = arith.constant 5.000000e-01 : f32
    %75 = vector.broadcast %cst_38 : f32 to vector<1x8xf32>
    %76 = arith.cmpf olt, %3, %75 : vector<1x8xf32>
    %cst_39 = arith.constant -1.000000e+09 : f32
    %77 = vector.shape_cast %76 : vector<1x8xi1> to vector<1x8xi1>
    %78 = vector.broadcast %77 : vector<1x8xi1> to vector<8x8xi1>
    %79 = vector.broadcast %cst_39 : f32 to vector<8x8xf32>
    %80 = arith.select %78, %79, %74 : vector<8x8xi1>, vector<8x8xf32>
    %cst_40 = arith.constant dense<0xFF800000> : vector<8xf32>
    %81 = vector.multi_reduction <maximumf>, %80, %cst_40 [1] : vector<8x8xf32> to vector<8xf32>
    %82 = vector.shape_cast %81 : vector<8xf32> to vector<8x1xf32>
    %83 = vector.broadcast %82 : vector<8x1xf32> to vector<8x8xf32>
    %84 = arith.subf %80, %83 : vector<8x8xf32>
    %85 = math.exp %84 : vector<8x8xf32>
    %cst_41 = arith.constant dense<0.000000e+00> : vector<8xf32>
    %86 = vector.multi_reduction <add>, %85, %cst_41 [1] : vector<8x8xf32> to vector<8xf32>
    %87 = vector.shape_cast %86 : vector<8xf32> to vector<8x1xf32>
    %88 = vector.broadcast %87 : vector<8x1xf32> to vector<8x8xf32>
    %89 = arith.divf %85, %88 : vector<8x8xf32>
    %cst_42 = arith.constant dense<0.000000e+00> : vector<8x8xf32>
    %90 = tpu.matmul %89, %71, %cst_42 {dimension_numbers = #tpu.dot_dimension_numbers<[1], [0], [0], [1], [0, 0, 1, 1], [], []>} : vector<8x8xf32>, vector<8x8xf32>, vector<8x8xf32> -> vector<8x8xf32>
    %91 = vector.extract_strided_slice %10 {offsets = [0, 24], sizes = [8, 8], strides = [1, 1]} : vector<8x32xf32> to vector<8x8xf32>
    %92 = vector.extract_strided_slice %17 {offsets = [0, 24], sizes = [8, 8], strides = [1, 1]} : vector<8x32xf32> to vector<8x8xf32>
    %93 = vector.extract_strided_slice %24 {offsets = [0, 24], sizes = [8, 8], strides = [1, 1]} : vector<8x32xf32> to vector<8x8xf32>
    %cst_43 = arith.constant dense<0.000000e+00> : vector<8x8xf32>
    %94 = tpu.matmul %91, %92, %cst_43 {dimension_numbers = #tpu.dot_dimension_numbers<[1], [1], [0], [0], [0, 0, 1, 0], [], []>} : vector<8x8xf32>, vector<8x8xf32>, vector<8x8xf32> -> vector<8x8xf32>
    %cst_44 = arith.constant 0.353553385 : f32
    %95 = vector.broadcast %cst_44 : f32 to vector<8x8xf32>
    %96 = arith.mulf %94, %95 : vector<8x8xf32>
    %cst_45 = arith.constant 5.000000e-01 : f32
    %97 = vector.broadcast %cst_45 : f32 to vector<1x8xf32>
    %98 = arith.cmpf olt, %3, %97 : vector<1x8xf32>
    %cst_46 = arith.constant -1.000000e+09 : f32
    %99 = vector.shape_cast %98 : vector<1x8xi1> to vector<1x8xi1>
    %100 = vector.broadcast %99 : vector<1x8xi1> to vector<8x8xi1>
    %101 = vector.broadcast %cst_46 : f32 to vector<8x8xf32>
    %102 = arith.select %100, %101, %96 : vector<8x8xi1>, vector<8x8xf32>
    %cst_47 = arith.constant dense<0xFF800000> : vector<8xf32>
    %103 = vector.multi_reduction <maximumf>, %102, %cst_47 [1] : vector<8x8xf32> to vector<8xf32>
    %104 = vector.shape_cast %103 : vector<8xf32> to vector<8x1xf32>
    %105 = vector.broadcast %104 : vector<8x1xf32> to vector<8x8xf32>
    %106 = arith.subf %102, %105 : vector<8x8xf32>
    %107 = math.exp %106 : vector<8x8xf32>
    %cst_48 = arith.constant dense<0.000000e+00> : vector<8xf32>
    %108 = vector.multi_reduction <add>, %107, %cst_48 [1] : vector<8x8xf32> to vector<8xf32>
    %109 = vector.shape_cast %108 : vector<8xf32> to vector<8x1xf32>
    %110 = vector.broadcast %109 : vector<8x1xf32> to vector<8x8xf32>
    %111 = arith.divf %107, %110 : vector<8x8xf32>
    %cst_49 = arith.constant dense<0.000000e+00> : vector<8x8xf32>
    %112 = tpu.matmul %111, %93, %cst_49 {dimension_numbers = #tpu.dot_dimension_numbers<[1], [0], [0], [1], [0, 0, 1, 1], [], []>} : vector<8x8xf32>, vector<8x8xf32>, vector<8x8xf32> -> vector<8x8xf32>
    %113 = tpu.concatenate %46, %68, %90, %112 in 1 : vector<8x8xf32>, vector<8x8xf32>, vector<8x8xf32>, vector<8x8xf32> -> vector<8x32xf32>
    %c0_50 = arith.constant 0 : index
    %c0_51 = arith.constant 0 : index
    %c0_52 = arith.constant 0 : index
    %114 = vector.load %arg9[%c0_50, %c0_51, %c0_52] : memref<1x8x32xf32, #tpu.memory_space<vmem>>, vector<1x8x32xf32>
    %115 = vector.shape_cast %114 : vector<1x8x32xf32> to vector<8x32xf32>
    %116 = vector.shape_cast %113 : vector<8x32xf32> to vector<1x8x32xf32>
    tpu.vector_store %arg9[%c0_50, %c0_51, %c0_52], %116 {strides = array<i32>} : memref<1x8x32xf32, #tpu.memory_space<vmem>>, vector<1x8x32xf32>,
    return
  }
  func.func @transform_0(%arg0: i32) -> (i32, i32, i32) {
    %c0_i32 = arith.constant 0 : i32
    %c0_i32_0 = arith.constant 0 : i32
    %c0_i32_1 = arith.constant 0 : i32
    return %arg0, %c0_i32, %c0_i32_0 : i32, i32, i32
  }
  func.func @transform_1(%arg0: i32) -> (i32, i32, i32) {
    %c0_i32 = arith.constant 0 : i32
    %c0_i32_0 = arith.constant 0 : i32
    %c0_i32_1 = arith.constant 0 : i32
    return %arg0, %c0_i32, %c0_i32_0 : i32, i32, i32
  }
  func.func @transform_2(%arg0: i32) -> (i32, i32) {
    %c0_i32 = arith.constant 0 : i32
    %c0_i32_0 = arith.constant 0 : i32
    %c0_i32_1 = arith.constant 0 : i32
    return %c0_i32, %c0_i32_0 : i32, i32
  }
  func.func @transform_3(%arg0: i32) -> (i32, i32) {
    %c0_i32 = arith.constant 0 : i32
    %c0_i32_0 = arith.constant 0 : i32
    %c0_i32_1 = arith.constant 0 : i32
    return %c0_i32, %c0_i32_0 : i32, i32
  }
  func.func @transform_4(%arg0: i32) -> (i32, i32) {
    %c0_i32 = arith.constant 0 : i32
    %c0_i32_0 = arith.constant 0 : i32
    %c0_i32_1 = arith.constant 0 : i32
    return %c0_i32, %c0_i32_0 : i32, i32
  }
  func.func @transform_5(%arg0: i32) -> (i32, i32) {
    %c0_i32 = arith.constant 0 : i32
    %c0_i32_0 = arith.constant 0 : i32
    %c0_i32_1 = arith.constant 0 : i32
    return %c0_i32, %c0_i32_0 : i32, i32
  }
  func.func @transform_6(%arg0: i32) -> (i32, i32) {
    %c0_i32 = arith.constant 0 : i32
    %c0_i32_0 = arith.constant 0 : i32
    %c0_i32_1 = arith.constant 0 : i32
    return %c0_i32, %c0_i32_0 : i32, i32
  }
  func.func @transform_7(%arg0: i32) -> (i32, i32) {
    %c0_i32 = arith.constant 0 : i32
    %c0_i32_0 = arith.constant 0 : i32
    %c0_i32_1 = arith.constant 0 : i32
    return %c0_i32, %c0_i32_0 : i32, i32
  }
  func.func @transform_8(%arg0: i32) -> (i32, i32, i32) {
    %c0_i32 = arith.constant 0 : i32
    %c0_i32_0 = arith.constant 0 : i32
    %c0_i32_1 = arith.constant 0 : i32
    return %arg0, %c0_i32, %c0_i32_0 : i32, i32, i32
  }
}

module attributes {stable_mosaic.version = 11 : i64} {
  func.func @_out_block_kernel(%arg0: i32, %arg1: memref<128x32xf32, #tpu.memory_space<vmem>>, %arg2: memref<128x32xf32, #tpu.memory_space<vmem>>, %arg3: memref<32x32xf32, #tpu.memory_space<vmem>>, %arg4: memref<1x32xf32, #tpu.memory_space<vmem>>, %arg5: memref<1x32xf32, #tpu.memory_space<vmem>>, %arg6: memref<1x32xf32, #tpu.memory_space<vmem>>, %arg7: memref<128x32xf32, #tpu.memory_space<vmem>>) attributes {dimension_semantics = [#tpu.dimension_semantics<parallel>], iteration_bounds = array<i64: 1>, scalar_prefetch = 0 : i64, scratch_operands = 0 : i64, tpu.core_type = #tpu.core_type<tc>, window_params = [{transform_indices = @transform_0, window_bounds = array<i64: 128, 32>}, {transform_indices = @transform_1, window_bounds = array<i64: 128, 32>}, {pipeline_mode = #tpu.pipeline_mode<synchronous>, transform_indices = @transform_2, window_bounds = array<i64: 32, 32>}, {pipeline_mode = #tpu.pipeline_mode<synchronous>, transform_indices = @transform_3, window_bounds = array<i64: 1, 32>}, {pipeline_mode = #tpu.pipeline_mode<synchronous>, transform_indices = @transform_4, window_bounds = array<i64: 1, 32>}, {pipeline_mode = #tpu.pipeline_mode<synchronous>, transform_indices = @transform_5, window_bounds = array<i64: 1, 32>}, {transform_indices = @transform_6, window_bounds = array<i64: 128, 32>}]} {
    %c0 = arith.constant 0 : index
    %c0_0 = arith.constant 0 : index
    %0 = vector.load %arg1[%c0, %c0_0] : memref<128x32xf32, #tpu.memory_space<vmem>>, vector<128x32xf32>
    %c0_1 = arith.constant 0 : index
    %c0_2 = arith.constant 0 : index
    %1 = vector.load %arg3[%c0_1, %c0_2] : memref<32x32xf32, #tpu.memory_space<vmem>>, vector<32x32xf32>
    %cst = arith.constant dense<0.000000e+00> : vector<128x32xf32>
    %2 = tpu.matmul %0, %1, %cst {dimension_numbers = #tpu.dot_dimension_numbers<[1], [0], [0], [1], [0, 0, 1, 1], [], []>} : vector<128x32xf32>, vector<32x32xf32>, vector<128x32xf32> -> vector<128x32xf32>
    %c0_3 = arith.constant 0 : index
    %c0_4 = arith.constant 0 : index
    %3 = vector.load %arg4[%c0_3, %c0_4] : memref<1x32xf32, #tpu.memory_space<vmem>>, vector<1x32xf32>
    %4 = vector.broadcast %3 : vector<1x32xf32> to vector<128x32xf32>
    %5 = arith.addf %2, %4 : vector<128x32xf32>
    %cst_5 = arith.constant 5.000000e-01 : f32
    %6 = vector.broadcast %cst_5 : f32 to vector<128x32xf32>
    %7 = arith.mulf %6, %5 : vector<128x32xf32>
    %cst_6 = arith.constant 4.471500e-02 : f32
    %8 = vector.broadcast %cst_6 : f32 to vector<128x32xf32>
    %9 = arith.mulf %8, %5 : vector<128x32xf32>
    %10 = arith.mulf %9, %5 : vector<128x32xf32>
    %11 = arith.mulf %10, %5 : vector<128x32xf32>
    %12 = arith.addf %5, %11 : vector<128x32xf32>
    %cst_7 = arith.constant 0.797884583 : f32
    %13 = vector.broadcast %cst_7 : f32 to vector<128x32xf32>
    %14 = arith.mulf %13, %12 : vector<128x32xf32>
    %15 = math.tanh %14 : vector<128x32xf32>
    %cst_8 = arith.constant 1.000000e+00 : f32
    %16 = vector.broadcast %cst_8 : f32 to vector<128x32xf32>
    %17 = arith.addf %16, %15 : vector<128x32xf32>
    %18 = arith.mulf %7, %17 : vector<128x32xf32>
    %c0_9 = arith.constant 0 : index
    %c0_10 = arith.constant 0 : index
    %19 = vector.load %arg2[%c0_9, %c0_10] : memref<128x32xf32, #tpu.memory_space<vmem>>, vector<128x32xf32>
    %20 = arith.addf %18, %19 : vector<128x32xf32>
    %cst_11 = arith.constant dense<0.000000e+00> : vector<128xf32>
    %21 = vector.multi_reduction <add>, %20, %cst_11 [1] : vector<128x32xf32> to vector<128xf32>
    %22 = vector.shape_cast %21 : vector<128xf32> to vector<128x1xf32>
    %cst_12 = arith.constant 3.200000e+01 : f32
    %23 = vector.broadcast %cst_12 : f32 to vector<128x1xf32>
    %24 = arith.divf %22, %23 : vector<128x1xf32>
    %25 = vector.broadcast %24 : vector<128x1xf32> to vector<128x32xf32>
    %26 = arith.subf %20, %25 : vector<128x32xf32>
    %27 = arith.mulf %26, %26 : vector<128x32xf32>
    %cst_13 = arith.constant dense<0.000000e+00> : vector<128xf32>
    %28 = vector.multi_reduction <add>, %27, %cst_13 [1] : vector<128x32xf32> to vector<128xf32>
    %29 = vector.shape_cast %28 : vector<128xf32> to vector<128x1xf32>
    %cst_14 = arith.constant 3.200000e+01 : f32
    %30 = vector.broadcast %cst_14 : f32 to vector<128x1xf32>
    %31 = arith.divf %29, %30 : vector<128x1xf32>
    %32 = vector.broadcast %24 : vector<128x1xf32> to vector<128x32xf32>
    %33 = arith.subf %20, %32 : vector<128x32xf32>
    %cst_15 = arith.constant 9.99999974E-6 : f32
    %34 = vector.broadcast %cst_15 : f32 to vector<128x1xf32>
    %35 = arith.addf %31, %34 : vector<128x1xf32>
    %36 = math.rsqrt %35 : vector<128x1xf32>
    %37 = vector.broadcast %36 : vector<128x1xf32> to vector<128x32xf32>
    %38 = arith.mulf %33, %37 : vector<128x32xf32>
    %c0_16 = arith.constant 0 : index
    %c0_17 = arith.constant 0 : index
    %39 = vector.load %arg5[%c0_16, %c0_17] : memref<1x32xf32, #tpu.memory_space<vmem>>, vector<1x32xf32>
    %40 = vector.broadcast %39 : vector<1x32xf32> to vector<128x32xf32>
    %41 = arith.mulf %38, %40 : vector<128x32xf32>
    %c0_18 = arith.constant 0 : index
    %c0_19 = arith.constant 0 : index
    %42 = vector.load %arg6[%c0_18, %c0_19] : memref<1x32xf32, #tpu.memory_space<vmem>>, vector<1x32xf32>
    %43 = vector.broadcast %42 : vector<1x32xf32> to vector<128x32xf32>
    %44 = arith.addf %41, %43 : vector<128x32xf32>
    %c0_20 = arith.constant 0 : index
    %c0_21 = arith.constant 0 : index
    %45 = vector.load %arg7[%c0_20, %c0_21] : memref<128x32xf32, #tpu.memory_space<vmem>>, vector<128x32xf32>
    tpu.vector_store %arg7[%c0_20, %c0_21], %44 {strides = array<i32>} : memref<128x32xf32, #tpu.memory_space<vmem>>, vector<128x32xf32>,
    return
  }
  func.func @transform_0(%arg0: i32) -> (i32, i32) {
    %c0_i32 = arith.constant 0 : i32
    %c0_i32_0 = arith.constant 0 : i32
    return %arg0, %c0_i32 : i32, i32
  }
  func.func @transform_1(%arg0: i32) -> (i32, i32) {
    %c0_i32 = arith.constant 0 : i32
    %c0_i32_0 = arith.constant 0 : i32
    return %arg0, %c0_i32 : i32, i32
  }
  func.func @transform_2(%arg0: i32) -> (i32, i32) {
    %c0_i32 = arith.constant 0 : i32
    %c0_i32_0 = arith.constant 0 : i32
    %c0_i32_1 = arith.constant 0 : i32
    return %c0_i32, %c0_i32_0 : i32, i32
  }
  func.func @transform_3(%arg0: i32) -> (i32, i32) {
    %c0_i32 = arith.constant 0 : i32
    %c0_i32_0 = arith.constant 0 : i32
    %c0_i32_1 = arith.constant 0 : i32
    return %c0_i32, %c0_i32_0 : i32, i32
  }
  func.func @transform_4(%arg0: i32) -> (i32, i32) {
    %c0_i32 = arith.constant 0 : i32
    %c0_i32_0 = arith.constant 0 : i32
    %c0_i32_1 = arith.constant 0 : i32
    return %c0_i32, %c0_i32_0 : i32, i32
  }
  func.func @transform_5(%arg0: i32) -> (i32, i32) {
    %c0_i32 = arith.constant 0 : i32
    %c0_i32_0 = arith.constant 0 : i32
    %c0_i32_1 = arith.constant 0 : i32
    return %c0_i32, %c0_i32_0 : i32, i32
  }
  func.func @transform_6(%arg0: i32) -> (i32, i32) {
    %c0_i32 = arith.constant 0 : i32
    %c0_i32_0 = arith.constant 0 : i32
    return %arg0, %c0_i32 : i32, i32
  }
}

</mosaic_0001>

<bundles_post_ra>
// kernel: transformer_layer.3
= control target key start
LH: loop header
LB: loop body
LE: loop exit
PB: predicated region body
PF: predicated region fallthrough
CT: control target
= control target key end

     0   :  { %vm50_vm0 = vcmask 261120   ;;  %s1404_s2 = inlined_call_operand.vmem [shape: f32[32,32], index: 2, kind: input, shape index: {}]   ;;  %s1405_s0 = inlined_call_operand.vmem [shape: f32[128,32], index: 0, kind: input, shape index: {}]   ;;  %s1406_s3 = inlined_call_operand.vmem [shape: f32[1,32], index: 3, kind: input, shape index: {}]   ;;  %s1407_s1 = inlined_call_operand.vmem [shape: f32[128,32], index: 1, kind: input, shape index: {}]   ;;  %s1408_s4 = inlined_call_operand.vmem [shape: f32[1,32], index: 4, kind: input, shape index: {}]   ;;  %s1409_s5 = inlined_call_operand.vmem [shape: f32[1,32], index: 5, kind: input, shape index: {}]   ;;  %s1410_s6 = inlined_call_operand.vmem [shape: f32[128,32], index: 6, kind: output, shape index: {}]  }
   0x1   :  { %v42_v0 = vld [vmem:[%s1404_s2 + $0x18] sm:$0xff]  ;;  %v41_v1 = vld [vmem:[%s1404_s2 + $0x10] sm:$0xff]  ;;  %v40_v2 = vld [vmem:[%s1404_s2 + $0x8] sm:$0xff] }
   0x2   :  { %734 = vmatprep.subr.mxu0 %v42_v0  ;;  %766 = vmatprep.subr.mxu1 %v42_v0  ;;  %v39_v3 = vld [vmem:[%s1404_s2] sm:$0xff]  ;;  %v24_v6 = vld [vmem:[%s1405_s0 + $0x8] sm:$0xff]  ;;  %v25_v8 = vld [vmem:[%s1405_s0 + $0x10] sm:$0xff] }
   0x3   :  { %735 = vmatpush3.msra.mxu0 %v42_v0  ;;  %770 = vmatpush3.msra.mxu1 %v42_v0  ;;  %v23_v4 = vld [vmem:[%s1405_s0] sm:$0xff]  ;;  %v32_v7 = vld [vmem:[%s1405_s0 + $0x48] sm:$0xff]  ;;  %v33_v9 = vld [vmem:[%s1405_s0 + $0x50] sm:$0xff] }
   0x4   :  { %736 = vmatprep.subr.mxu0 %v41_v1  ;;  %767 = vmatprep.subr.mxu1 %v41_v1  ;;  %v31_v5 = vld [vmem:[%s1405_s0 + $0x40] sm:$0xff]  ;;  %v26_v10 = vld [vmem:[%s1405_s0 + $0x18] sm:$0xff]  ;;  %v28_v14 = vld [vmem:[%s1405_s0 + $0x28] sm:$0xff] }
   0x5   :  { %737 = vmatpush3.msra.mxu0 %v41_v1  ;;  %771 = vmatpush3.msra.mxu1 %v41_v1  ;;  %v34_v11 = vld [vmem:[%s1405_s0 + $0x58] sm:$0xff]  ;;  %v27_v12 = vld [vmem:[%s1405_s0 + $0x20] sm:$0xff]  ;;  %v36_v15 = vld [vmem:[%s1405_s0 + $0x68] sm:$0xff] }
   0x6   :  { %738 = vmatprep.subr.mxu0 %v40_v2  ;;  %768 = vmatprep.subr.mxu1 %v40_v2  ;;  %v35_v13 = vld [vmem:[%s1405_s0 + $0x60] sm:$0xff]  ;;  %v29_v16 = vld [vmem:[%s1405_s0 + $0x30] sm:$0xff]  ;;  %v30_v18 = vld [vmem:[%s1405_s0 + $0x38] sm:$0xff] }
   0x7   :  { %739 = vmatpush3.msra.mxu0 %v40_v2  ;;  %772 = vmatpush3.msra.mxu1 %v40_v2  ;;  %v37_v17 = vld [vmem:[%s1405_s0 + $0x70] sm:$0xff]  ;;  %v38_v19 = vld [vmem:[%s1405_s0 + $0x78] sm:$0xff]  ;;  %v952_v20 = vld [vmem:[%s1406_s3] ss:$0 sm:$0xff] }
   0x8   :  { %740 = vmatprep.subr.mxu0 %v39_v3  ;;  %769 = vmatprep.subr.mxu1 %v39_v3 }
   0x9   :  { %741 = vmatpush3.msra.mxu0 %v39_v3  ;;  %773 = vmatpush3.msra.mxu1 %v39_v3 }
   0xa   :  { %742 = vmatprep.mubr.msk.f32.mxu0 %vm50_vm0, %v23_v4  ;;  %754 = vmatprep.mubr.msk.f32.mxu1 %vm50_vm0, %v31_v5 }
   0xb   :  { %743 = vmatmul.mubr.msk.f32.vlgmr.msra.gmra.mxu0 %vm50_vm0, %v24_v6  ;;  %755 = vmatmul.mubr.msk.f32.vlgmr.msra.gmra.mxu1 %vm50_vm0, %v32_v7 }
   0xc   :  { %745 = vmatprep.mubr.msk.f32.mxu0 %vm50_vm0, %v25_v8  ;;  %757 = vmatprep.mubr.msk.f32.mxu1 %vm50_vm0, %v33_v9 }
   0xf   :  { %746 = vmatmul.mubr.msk.f32.gmra.mxu0 %vm50_vm0, %v26_v10  ;;  %758 = vmatmul.mubr.msk.f32.gmra.mxu1 %vm50_vm0, %v34_v11 }
  0x10   :  { %748 = vmatprep.mubr.msk.f32.mxu0 %vm50_vm0, %v27_v12  ;;  %760 = vmatprep.mubr.msk.f32.mxu1 %vm50_vm0, %v35_v13 }
  0x13   :  { %749 = vmatmul.mubr.msk.f32.gmra.mxu0 %vm50_vm0, %v28_v14  ;;  %761 = vmatmul.mubr.msk.f32.gmra.mxu1 %vm50_vm0, %v36_v15 }
  0x14   :  { %751 = vmatprep.mubr.msk.f32.mxu0 %vm50_vm0, %v29_v16  ;;  %763 = vmatprep.mubr.msk.f32.mxu1 %vm50_vm0, %v37_v17 }
  0x17   :  { %752 = vmatmul.mubr.msk.f32.gmra.mxu0 %vm50_vm0, %v30_v18  ;;  %764 = vmatmul.mubr.msk.f32.gmra.mxu1 %vm50_vm0, %v38_v19 }
  0xcb   :  { %v744_v21 = vpop.f32.mrf.mxu0  ;;  %v756_v22 = vpop.f32.mrf.mxu1 }
  0xcc   :  { %v171_v23 = vadd.f32 %v744_v21, %v952_v20  ;;  %v211_v24 = vadd.f32 %v756_v22, %v952_v20 }
  0xcd   :  { %v165_v25 = vpop.f32.mrf.mxu0  ;;  %v205_v26 = vpop.f32.mrf.mxu1 }
  0xce   :  { %v261_v27 = vmul.f32 0.044715, %v171_v23  ;;  %v269_v28 = vmul.f32 0.044715, %v211_v24  ;;  %v957_v33 = vadd.f32 %v952_v20, %v165_v25  ;;  %v966_v38 = vadd.f32 %v952_v20, %v205_v26 }
  0xcf   :  { %v747_v29 = vpop.f32.mrf.mxu0  ;;  %v759_v30 = vpop.f32.mrf.mxu1  ;;  %v1005_v8 = vmul.f32 0.5, %v211_v24  ;;  %v1007_v9 = vmul.f32 0.5, %v171_v23 }
  0xd0   :  { %v277_v31 = vmul.f32 %v261_v27, %v171_v23  ;;  %v285_v32 = vmul.f32 %v269_v28, %v211_v24  ;;  %v960_v34 = vadd.f32 %v747_v29, %v952_v20  ;;  %v963_v35 = vadd.f32 %v759_v30, %v952_v20 }
  0xd1   :  { %v175_v36 = vpop.f32.mrf.mxu0  ;;  %v215_v37 = vpop.f32.mrf.mxu1  ;;  %v260_v48 = vmul.f32 0.044715, %v957_v33  ;;  %v268_v54 = vmul.f32 0.044715, %v966_v38 }
  0xd2   :  { %v969_v39 = vadd.f32 %v952_v20, %v175_v36  ;;  %v972_v40 = vadd.f32 %v952_v20, %v215_v37  ;;  %v263_v41 = vmul.f32 0.044715, %v960_v34  ;;  %v301_v44 = vmul.f32 %v285_v32, %v211_v24 }
  0xd3   :  { %v750_v42 = vpop.f32.mrf.mxu0  ;;  %v762_v43 = vpop.f32.mrf.mxu1  ;;  %v293_v45 = vmul.f32 %v277_v31, %v171_v23  ;;  %v271_v49 = vmul.f32 0.044715, %v963_v35  ;;  %v276_v3 = vmul.f32 %v260_v48, %v957_v33  ;;  %v284_v6 = vmul.f32 %v268_v54, %v966_v38 }
  0xd4   :  { %v976_v46 = vadd.f32 %v750_v42, %v952_v20  ;;  %v979_v47 = vadd.f32 %v762_v43, %v952_v20  ;;  %v317_v52 = vadd.f32 %v301_v44, %v211_v24  ;;  %v262_v55 = vmul.f32 0.044715, %v969_v39 }
  0xd5   :  { %v185_v50 = vpop.f32.mrf.mxu0  ;;  %v225_v51 = vpop.f32.mrf.mxu1  ;;  %v309_v53 = vadd.f32 %v293_v45, %v171_v23  ;;  %v270_v56 = vmul.f32 0.044715, %v972_v40  ;;  %v279_v57 = vmul.f32 %v263_v41, %v960_v34  ;;  %v287_v4 = vmul.f32 %v271_v49, %v963_v35 }
  0xd6   :  { %v988_v58 = vadd.f32 %v952_v20, %v185_v50  ;;  %v333_v61 = vmul.f32 0.7978846, %v317_v52  ;;  %v265_v63 = vmul.f32 0.044715, %v976_v46  ;;  %v273_v0 = vmul.f32 0.044715, %v979_v47 }
  0xd7   :  { %v753_v59 = vpop.f32.mrf.mxu0  ;;  %v765_v60 = vpop.f32.mrf.mxu1  ;;  %v325_v62 = vmul.f32 0.7978846, %v309_v53  ;;  %v993_v1 = vadd.f32 %v952_v20, %v225_v51  ;;  %v278_v10 = vmul.f32 %v262_v55, %v969_v39  ;;  %v286_v11 = vmul.f32 %v270_v56, %v972_v40 }
  0xd8   :  { %v996_v2 = vadd.f32 %v753_v59, %v952_v20  ;;  %v1001_v5 = vadd.f32 %v765_v60, %v952_v20  ;;  %774 = vtanh.f32 %v333_v61  ;;  %v264_v7 = vmul.f32 0.044715, %v988_v58 }
  0xd9   :  { %v195_v12 = vpop.f32.mrf.mxu0  ;;  %v235_v13 = vpop.f32.mrf.mxu1  ;;  %776 = vtanh.f32 %v325_v62  ;;  %v295_v14 = vmul.f32 %v279_v57, %v960_v34  ;;  %v281_v15 = vmul.f32 %v265_v63, %v976_v46  ;;  %v289_v16 = vmul.f32 %v273_v0, %v979_v47 }
  0xda   :  { %v272_v17 = vmul.f32 0.044715, %v993_v1  ;;  %v267_v18 = vmul.f32 0.044715, %v996_v2  ;;  %v275_v19 = vmul.f32 0.044715, %v1001_v5  ;;  %v292_v22 = vmul.f32 %v276_v3, %v957_v33 }
  0xdb   :  { %v311_v21 = vadd.f32 %v295_v14, %v960_v34  ;;  %v303_v23 = vmul.f32 %v287_v4, %v963_v35  ;;  %v280_v24 = vmul.f32 %v264_v7, %v988_v58  ;;  %v1022_v25 = vadd.f32 %v952_v20, %v195_v12 }
  0xdc   :  { %v1025_v26 = vadd.f32 %v952_v20, %v235_v13  ;;  %v300_v27 = vmul.f32 %v284_v6, %v966_v38  ;;  %v308_v29 = vadd.f32 %v292_v22, %v957_v33  ;;  %v294_v31 = vmul.f32 %v278_v10, %v969_v39  ;;  %v397_v10 = vld [vmem:[%s1407_s1 + $0x48] sm:$0xff] }
  0xdd   :  { %v327_v28 = vmul.f32 0.7978846, %v311_v21  ;;  %v319_v30 = vadd.f32 %v303_v23, %v963_v35  ;;  %v288_v32 = vmul.f32 %v272_v17, %v993_v1  ;;  %v283_v36 = vmul.f32 %v267_v18, %v996_v2 }
  0xde   :  { %v316_v37 = vadd.f32 %v300_v27, %v966_v38  ;;  %v302_v41 = vmul.f32 %v286_v11, %v972_v40  ;;  %v324_v20 = vmul.f32 0.7978846, %v308_v29  ;;  %v310_v43 = vadd.f32 %v294_v31, %v969_v39 }
  0xdf   :  { %778 = vtanh.f32 %v327_v28  ;;  %v335_v42 = vmul.f32 0.7978846, %v319_v30  ;;  %v266_v44 = vmul.f32 0.044715, %v1022_v25  ;;  %v297_v49 = vmul.f32 %v281_v15, %v976_v46 }
  0xe0   :  { %v332_v45 = vmul.f32 0.7978846, %v316_v37  ;;  %v318_v48 = vadd.f32 %v302_v41, %v972_v40  ;;  %v274_v50 = vmul.f32 0.044715, %v1025_v26  ;;  %780 = vtanh.f32 %v324_v20 }
  0xe1   :  { %v326_v51 = vmul.f32 0.7978846, %v310_v43  ;;  %v296_v52 = vmul.f32 %v280_v24, %v988_v58  ;;  %782 = vtanh.f32 %v335_v42  ;;  %v313_v54 = vadd.f32 %v297_v49, %v976_v46  ;;  %v391_v42 = vld [vmem:[%s1407_s1 + $0x18] sm:$0xff] }
  0xe2   :  { %v334_v53 = vmul.f32 0.7978846, %v318_v48  ;;  %v305_v55 = vmul.f32 %v289_v16, %v979_v47  ;;  %v291_v56 = vmul.f32 %v275_v19, %v1001_v5  ;;  %784 = vtanh.f32 %v332_v45  ;;  %v389_v16 = vld [vmem:[%s1407_s1 + $0x8] sm:$0xff] }
  0xe3   :  { %v312_v57 = vadd.f32 %v296_v52, %v988_v58  ;;  %v304_v59 = vmul.f32 %v288_v32, %v993_v1  ;;  %v282_v61 = vmul.f32 %v266_v44, %v1022_v25  ;;  %786 = vtanh.f32 %v326_v51 }
  0xe4   :  { %v329_v62 = vmul.f32 0.7978846, %v313_v54  ;;  %v321_v63 = vadd.f32 %v305_v55, %v979_v47  ;;  %788 = vtanh.f32 %v334_v53  ;;  %v290_v7 = vmul.f32 %v274_v50, %v1025_v26 }
  0xe5   :  { %v775_v60 = vpop.eup %774  ;;  %v328_v3 = vmul.f32 0.7978846, %v312_v57  ;;  %v320_v4 = vadd.f32 %v304_v59, %v993_v1  ;;  %v299_v12 = vmul.f32 %v283_v36, %v996_v2  ;;  %v298_v18 = vmul.f32 %v282_v61, %v1022_v25  ;;  %v396_v61 = vld [vmem:[%s1407_s1 + $0x40] sm:$0xff] }
  0xe6   :  { %v365_v0 = vadd.f32 1.0, %v775_v60  ;;  %v777_v6 = vpop.eup %776  ;;  %790 = vtanh.f32 %v329_v62  ;;  %v337_v11 = vmul.f32 0.7978846, %v321_v63  ;;  %v307_v22 = vmul.f32 %v291_v56, %v1001_v5 }
  0xe7   :  { %v357_v14 = vadd.f32 1.0, %v777_v6  ;;  %792 = vtanh.f32 %v328_v3  ;;  %v336_v15 = vmul.f32 0.7978846, %v320_v4  ;;  %v315_v17 = vadd.f32 %v299_v12, %v996_v2 }
  0xe8   :  { %v381_v13 = vmul.f32 %v365_v0, %v1005_v8  ;;  %794 = vtanh.f32 %v337_v11  ;;  %v314_v23 = vadd.f32 %v298_v18, %v1022_v25  ;;  %v306_v24 = vmul.f32 %v290_v7, %v1025_v26 }
  0xe9   :  { %v373_v21 = vmul.f32 %v357_v14, %v1007_v9  ;;  %796 = vtanh.f32 %v336_v15  ;;  %v331_v8 = vmul.f32 0.7978846, %v315_v17  ;;  %v323_v29 = vadd.f32 %v307_v22, %v1001_v5 }
  0xea   :  { %v1060_v19 = vadd.f32 %v397_v10, %v381_v13  ;;  %v330_v31 = vmul.f32 0.7978846, %v314_v23  ;;  %v322_v9 = vadd.f32 %v306_v24, %v1025_v26  ;;  %v247_v36 = vmul.f32 0.5, %v960_v34  ;;  %v388_v34 = vld [vmem:[%s1407_s1] sm:$0xff] }
  0xeb   :  { %v1068_v28 = vadd.f32 %v389_v16, %v373_v21  ;;  %798 = vtanh.f32 %v331_v8  ;;  %v339_v41 = vmul.f32 0.7978846, %v323_v29  ;;  %v244_v48 = vmul.f32 0.5, %v957_v33  ;;  %v399_v33 = vld [vmem:[%s1407_s1 + $0x58] sm:$0xff]  ;;  %v398_v21 = vld [vmem:[%s1407_s1 + $0x50] sm:$0xff] }
  0xec   :  { %v447_v27 = vsel %vm50_vm0, %v1060_v19, 0.0  ;;  %v779_v30 = vpop.eup %778  ;;  %800 = vtanh.f32 %v330_v31  ;;  %v338_v43 = vmul.f32 0.7978846, %v322_v9  ;;  %v255_v51 = vmul.f32 0.5, %v963_v35 }
  0xed   :  { %448 = vadd.xlane.f32.xlu1 %v447_v27  ;;  %v423_v32 = vsel %vm50_vm0, %v1068_v28, 0.0  ;;  %v359_v37 = vadd.f32 1.0, %v779_v30  ;;  %v781_v20 = vpop.eup %780  ;;  %802 = vtanh.f32 %v339_v41  ;;  %v252_v53 = vmul.f32 0.5, %v966_v38  ;;  %v393_v27 = vld [vmem:[%s1407_s1 + $0x28] sm:$0xff] }
  0xee   :  { %424 = vadd.xlane.f32.xlu0 %v423_v32  ;;  %v783_v44 = vpop.eup %782  ;;  %v356_v49 = vadd.f32 1.0, %v781_v20  ;;  %804 = vtanh.f32 %v338_v43  ;;  %v246_v35 = vmul.f32 0.5, %v969_v39  ;;  %v254_v38 = vmul.f32 0.5, %v972_v40  ;;  %v390_v39 = vld [vmem:[%s1407_s1 + $0x10] sm:$0xff] }
  0xef   :  { %v375_v45 = vmul.f32 %v359_v37, %v247_v36  ;;  %v785_v50 = vpop.eup %784  ;;  %v367_v52 = vadd.f32 1.0, %v783_v44  ;;  %v249_v12 = vmul.f32 0.5, %v976_v46  ;;  %v248_v22 = vmul.f32 0.5, %v988_v58  ;;  %v392_v36 = vld [vmem:[%s1407_s1 + $0x20] sm:$0xff] }
  0xf0   :  { %v787_v54 = vpop.eup %786  ;;  %v372_v56 = vmul.f32 %v356_v49, %v244_v48  ;;  %v364_v57 = vadd.f32 1.0, %v785_v50  ;;  %v257_v29 = vmul.f32 0.5, %v979_v47  ;;  %v256_v37 = vmul.f32 0.5, %v993_v1 }
  0xf1   :  { %v1084_v55 = vadd.f32 %v391_v42, %v375_v45  ;;  %v789_v59 = vpop.eup %788  ;;  %v383_v60 = vmul.f32 %v367_v52, %v255_v51  ;;  %v358_v62 = vadd.f32 1.0, %v787_v54  ;;  %v401_v45 = vld [vmem:[%s1407_s1 + $0x68] sm:$0xff]  ;;  %v251_v48 = vmul.f32 0.5, %v996_v2  ;;  %v400_v52 = vld [vmem:[%s1407_s1 + $0x60] sm:$0xff] }
  0xf2   :  { %v1096_v3 = vadd.f32 %v388_v34, %v372_v56  ;;  %v380_v4 = vmul.f32 %v364_v57, %v252_v53  ;;  %v366_v6 = vadd.f32 1.0, %v789_v59  ;;  %v250_v53 = vmul.f32 0.5, %v1022_v25  ;;  %v395_v57 = vld [vmem:[%s1407_s1 + $0x38] sm:$0xff] }
  0xf3   :  { %v791_v63 = vpop.eup %790  ;;  %v429_v0 = vsel %vm50_vm0, %v1084_v55, 0.0  ;;  %v1098_v10 = vadd.f32 %v399_v33, %v383_v60  ;;  %v374_v11 = vmul.f32 %v358_v62, %v246_v35  ;;  %v259_v59 = vmul.f32 0.5, %v1001_v5  ;;  %v394_v62 = vld [vmem:[%s1407_s1 + $0x30] sm:$0xff] }
  0xf4   :  { %v793_v7 = vpop.eup %792  ;;  %430 = vadd.xlane.f32.xlu1 %v429_v0  ;;  %v361_v40 = vadd.f32 1.0, %v791_v63  ;;  %v420_v14 = vsel %vm50_vm0, %v1096_v3, 0.0  ;;  %v1106_v15 = vadd.f32 %v396_v61, %v380_v4  ;;  %v382_v16 = vmul.f32 %v366_v6, %v254_v38  ;;  %v403_v4 = vld [vmem:[%s1407_s1 + $0x78] sm:$0xff] }
  0xf5   :  { %v795_v13 = vpop.eup %794  ;;  %v360_v17 = vadd.f32 1.0, %v793_v7  ;;  %421 = vadd.xlane.f32.xlu0 %v420_v14  ;;  %v453_v46 = vsel %vm50_vm0, %v1098_v10, 0.0  ;;  %v1114_v8 = vadd.f32 %v390_v39, %v374_v11  ;;  %v258_v5 = vmul.f32 0.5, %v1025_v26  ;;  %v402_v39 = vld [vmem:[%s1407_s1 + $0x70] sm:$0xff] }
  0xf6   :  { %v797_v18 = vpop.eup %796  ;;  %v377_v23 = vmul.f32 %v361_v40, %v249_v12  ;;  %v369_v24 = vadd.f32 1.0, %v795_v13  ;;  %v444_v31 = vsel %vm50_vm0, %v1106_v15, 0.0  ;;  %v1122_v9 = vadd.f32 %v398_v21, %v382_v16 }
  0xf7   :  { %v376_v58 = vmul.f32 %v360_v17, %v248_v22  ;;  %v368_v32 = vadd.f32 1.0, %v797_v18  ;;  %v426_v20 = vsel %vm50_vm0, %v1114_v8, 0.0 }
  0xf8   :  { %454 = vadd.xlane.f32.xlu1 %v453_v46  ;;  %v799_v30 = vpop.eup %798  ;;  %v1130_v47 = vadd.f32 %v393_v27, %v377_v23  ;;  %v385_v42 = vmul.f32 %v369_v24, %v257_v29  ;;  %v450_v49 = vsel %vm50_vm0, %v1122_v9, 0.0 }
  0xf9   :  { %445 = vadd.xlane.f32.xlu0 %v444_v31  ;;  %v801_v41 = vpop.eup %800  ;;  %v363_v43 = vadd.f32 1.0, %v799_v30  ;;  %v1138_v1 = vadd.f32 %v392_v36, %v376_v58  ;;  %v384_v50 = vmul.f32 %v368_v32, %v256_v37 }
  0xfa   :  { %v803_v44 = vpop.eup %802  ;;  %v362_v34 = vadd.f32 1.0, %v801_v41  ;;  %v435_v54 = vsel %vm50_vm0, %v1130_v47, 0.0  ;;  %v1146_v56 = vadd.f32 %v401_v45, %v385_v42 }
  0xfb   :  { %v805_v51 = vpop.eup %804  ;;  %v379_v2 = vmul.f32 %v363_v43, %v251_v48  ;;  %v371_v33 = vadd.f32 1.0, %v803_v44  ;;  %v432_v60 = vsel %vm50_vm0, %v1138_v1, 0.0  ;;  %v1154_v61 = vadd.f32 %v400_v52, %v384_v50 }
  0xfc   :  { %427 = vadd.xlane.f32.xlu1 %v426_v20  ;;  %v378_v25 = vmul.f32 %v362_v34, %v250_v53  ;;  %v370_v35 = vadd.f32 1.0, %v805_v51  ;;  %v459_v38 = vsel %vm50_vm0, %v1146_v56, 0.0 }
  0xfd   :  { %451 = vadd.xlane.f32.xlu0 %v450_v49  ;;  %v1161_v63 = vadd.f32 %v395_v57, %v379_v2  ;;  %v387_v0 = vmul.f32 %v371_v33, %v259_v59  ;;  %v456_v6 = vsel %vm50_vm0, %v1154_v61, 0.0 }
  0xfe   :  { %v1169_v7 = vadd.f32 %v394_v62, %v378_v25  ;;  %v386_v11 = vmul.f32 %v370_v35, %v258_v5 }
  0xff   :  { %v441_v12 = vsel %vm50_vm0, %v1161_v63, 0.0  ;;  %v1176_v26 = vadd.f32 %v403_v4, %v387_v0 }
 0x100   :  { %436 = vadd.xlane.f32.xlu1 %v435_v54  ;;  %v438_v40 = vsel %vm50_vm0, %v1169_v7, 0.0  ;;  %v1180_v13 = vadd.f32 %v402_v39, %v386_v11 }
 0x101   :  { %433 = vadd.xlane.f32.xlu0 %v432_v60  ;;  %v465_v14 = vsel %vm50_vm0, %v1176_v26, 0.0 }
 0x102   :  { %v462_v16 = vsel %vm50_vm0, %v1180_v13, 0.0 }
 0x104   :  { %460 = vadd.xlane.f32.xlu1 %v459_v38 }
 0x105   :  { %457 = vadd.xlane.f32.xlu0 %v456_v6 }
 0x108   :  { %442 = vadd.xlane.f32.xlu1 %v441_v12 }
 0x109   :  { %439 = vadd.xlane.f32.xlu0 %v438_v40 }
 0x10c   :  { %466 = vadd.xlane.f32.xlu1 %v465_v14 }
 0x10d   :  { %463 = vadd.xlane.f32.xlu0 %v462_v16 }
 0x176   :  { %v449_v17 = vpop.xlane.xlu1 %448 }
 0x177   :  { %v478_v18 = vmul.f32 0.03125, %v449_v17  ;;  %v425_v21 = vpop.xlane.xlu0 %424 }
 0x178   :  { %v470_v22 = vmul.f32 0.03125, %v425_v21 }
 0x179   :  { %v1187_v46 = vsub.f32 %v1060_v19, %v478_v18 }
 0x17a   :  { %v1190_v23 = vsub.f32 %v1068_v28, %v470_v22 }
 0x17b   :  { %v510_v31 = vmul.f32 %v1187_v46, %v1187_v46 }
 0x17c   :  { %v502_v24 = vmul.f32 %v1190_v23, %v1190_v23 }
 0x17d   :  { %v431_v27 = vpop.xlane.xlu1 %430  ;;  %v544_v41 = vsel %vm50_vm0, %v510_v31, 0.0 }
 0x17e   :  { %v472_v29 = vmul.f32 0.03125, %v431_v27  ;;  %v520_v30 = vsel %vm50_vm0, %v502_v24, 0.0  ;;  %v422_v58 = vpop.xlane.xlu0 %421 }
 0x17f   :  { %521 = vadd.xlane.f32.xlu1 %v520_v30  ;;  %v469_v19 = vmul.f32 0.03125, %v422_v58 }
 0x180   :  { %v1198_v32 = vsub.f32 %v1084_v55, %v472_v29 }
 0x181   :  { %v455_v36 = vpop.xlane.xlu1 %454  ;;  %v1201_v28 = vsub.f32 %v1096_v3, %v469_v19 }
 0x182   :  { %v480_v37 = vmul.f32 0.03125, %v455_v36  ;;  %v504_v20 = vmul.f32 %v1198_v32, %v1198_v32  ;;  %v446_v42 = vpop.xlane.xlu0 %445 }
 0x183   :  { %545 = vadd.xlane.f32.xlu1 %v544_v41  ;;  %v477_v44 = vmul.f32 0.03125, %v446_v42  ;;  %v501_v55 = vmul.f32 %v1201_v28, %v1201_v28 }
 0x184   :  { %v1207_v43 = vsub.f32 %v1098_v10, %v480_v37  ;;  %v526_v48 = vsel %vm50_vm0, %v504_v20, 0.0 }
 0x185   :  { %v428_v45 = vpop.xlane.xlu1 %427  ;;  %v1213_v3 = vsub.f32 %v1106_v15, %v477_v44  ;;  %v517_v50 = vsel %vm50_vm0, %v501_v55, 0.0 }
 0x186   :  { %v471_v49 = vmul.f32 0.03125, %v428_v45  ;;  %v512_v34 = vmul.f32 %v1207_v43, %v1207_v43  ;;  %518 = vadd.xlane.f32.xlu0 %v517_v50  ;;  %v452_v51 = vpop.xlane.xlu0 %451 }
 0x187   :  { %527 = vadd.xlane.f32.xlu1 %v526_v48  ;;  %v479_v52 = vmul.f32 0.03125, %v452_v51  ;;  %v509_v53 = vmul.f32 %v1213_v3, %v1213_v3 }
 0x188   :  { %v1219_v10 = vsub.f32 %v1114_v8, %v471_v49  ;;  %v550_v15 = vsel %vm50_vm0, %v512_v34, 0.0 }
 0x189   :  { %v437_v54 = vpop.xlane.xlu1 %436  ;;  %v1225_v2 = vsub.f32 %v1122_v9, %v479_v52  ;;  %v541_v57 = vsel %vm50_vm0, %v509_v53, 0.0 }
 0x18a   :  { %v474_v33 = vmul.f32 0.03125, %v437_v54  ;;  %v503_v59 = vmul.f32 %v1219_v10, %v1219_v10  ;;  %542 = vadd.xlane.f32.xlu0 %v541_v57  ;;  %v434_v60 = vpop.xlane.xlu0 %433 }
 0x18b   :  { %551 = vadd.xlane.f32.xlu1 %v550_v15  ;;  %v473_v25 = vmul.f32 0.03125, %v434_v60  ;;  %v511_v5 = vmul.f32 %v1225_v2, %v1225_v2 }
 0x18c   :  { %v1231_v8 = vsub.f32 %v1130_v47, %v474_v33  ;;  %v523_v35 = vsel %vm50_vm0, %v503_v59, 0.0 }
 0x18d   :  { %v461_v62 = vpop.xlane.xlu1 %460  ;;  %v1235_v38 = vsub.f32 %v1138_v1, %v473_v25  ;;  %v547_v14 = vsel %vm50_vm0, %v511_v5, 0.0  ;;  %v1285_v5 = vld [vmem:[%s1408_s4] ss:$0 sm:$0xff] }
 0x18e   :  { %v482_v9 = vmul.f32 0.03125, %v461_v62  ;;  %v506_v0 = vmul.f32 %v1231_v8, %v1231_v8  ;;  %524 = vadd.xlane.f32.xlu0 %v523_v35  ;;  %v458_v4 = vpop.xlane.xlu0 %457 }
 0x18f   :  { %v481_v47 = vmul.f32 0.03125, %v458_v4  ;;  %v505_v1 = vmul.f32 %v1235_v38, %v1235_v38 }
 0x190   :  { %v1242_v6 = vsub.f32 %v1146_v56, %v482_v9  ;;  %v532_v11 = vsel %vm50_vm0, %v506_v0, 0.0 }
 0x191   :  { %533 = vadd.xlane.f32.xlu1 %v532_v11  ;;  %v443_v39 = vpop.xlane.xlu1 %442  ;;  %v1248_v12 = vsub.f32 %v1154_v61, %v481_v47  ;;  %v529_v24 = vsel %vm50_vm0, %v505_v1, 0.0  ;;  %v1291_v1 = vld [vmem:[%s1409_s5] ss:$0 sm:$0xff] }
 0x192   :  { %v476_v40 = vmul.f32 0.03125, %v443_v39  ;;  %v514_v16 = vmul.f32 %v1242_v6, %v1242_v6  ;;  %548 = vadd.xlane.f32.xlu0 %v547_v14  ;;  %v440_v56 = vpop.xlane.xlu0 %439 }
 0x193   :  { %v475_v18 = vmul.f32 0.03125, %v440_v56  ;;  %v513_v30 = vmul.f32 %v1248_v12, %v1248_v12 }
 0x194   :  { %v1254_v17 = vsub.f32 %v1161_v63, %v476_v40  ;;  %v556_v21 = vsel %vm50_vm0, %v514_v16, 0.0 }
 0x195   :  { %557 = vadd.xlane.f32.xlu1 %v556_v21  ;;  %v467_v22 = vpop.xlane.xlu1 %466  ;;  %v1259_v61 = vsub.f32 %v1169_v7, %v475_v18  ;;  %v553_v7 = vsel %vm50_vm0, %v513_v30, 0.0 }
 0x196   :  { %v484_v27 = vmul.f32 0.03125, %v467_v22  ;;  %v508_v29 = vmul.f32 %v1254_v17, %v1254_v17  ;;  %530 = vadd.xlane.f32.xlu0 %v529_v24  ;;  %v464_v63 = vpop.xlane.xlu0 %463 }
 0x197   :  { %v483_v58 = vmul.f32 0.03125, %v464_v63  ;;  %v507_v41 = vmul.f32 %v1259_v61, %v1259_v61 }
 0x198   :  { %v1266_v31 = vsub.f32 %v1176_v26, %v484_v27  ;;  %v538_v19 = vsel %vm50_vm0, %v508_v29, 0.0 }
 0x199   :  { %539 = vadd.xlane.f32.xlu1 %v538_v19  ;;  %v1270_v36 = vsub.f32 %v1180_v13, %v483_v58  ;;  %v535_v26 = vsel %vm50_vm0, %v507_v41, 0.0 }
 0x19a   :  { %v516_v37 = vmul.f32 %v1266_v31, %v1266_v31  ;;  %554 = vadd.xlane.f32.xlu0 %v553_v7 }
 0x19b   :  { %v515_v42 = vmul.f32 %v1270_v36, %v1270_v36 }
 0x19c   :  { %v562_v20 = vsel %vm50_vm0, %v516_v37, 0.0 }
 0x19d   :  { %563 = vadd.xlane.f32.xlu1 %v562_v20  ;;  %v559_v13 = vsel %vm50_vm0, %v515_v42, 0.0 }
 0x19e   :  { %536 = vadd.xlane.f32.xlu0 %v535_v26 }
 0x1a2   :  { %560 = vadd.xlane.f32.xlu0 %v559_v13 }
 0x208   :  { %v522_v44 = vpop.xlane.xlu1 %521 }
 0x209   :  { %v566_v55 = vmul.f32 0.03125, %v522_v44 }
 0x20b   :  { %v582_v45 = vadd.f32 1e-05, %v566_v55 }
 0x20c   :  { %v546_v48 = vpop.xlane.xlu1 %545 }
 0x20d   :  { %806 = vrsqrt.f32 %v582_v45  ;;  %v574_v49 = vmul.f32 0.03125, %v546_v48 }
 0x20f   :  { %v590_v50 = vadd.f32 1e-05, %v574_v49  ;;  %v519_v34 = vpop.xlane.xlu0 %518 }
 0x210   :  { %v528_v51 = vpop.xlane.xlu1 %527  ;;  %v565_v52 = vmul.f32 0.03125, %v519_v34 }
 0x211   :  { %808 = vrsqrt.f32 %v590_v50  ;;  %v568_v53 = vmul.f32 0.03125, %v528_v51 }
 0x212   :  { %v581_v54 = vadd.f32 1e-05, %v565_v52 }
 0x213   :  { %v584_v15 = vadd.f32 1e-05, %v568_v53  ;;  %v543_v33 = vpop.xlane.xlu0 %542 }
 0x214   :  { %v552_v57 = vpop.xlane.xlu1 %551  ;;  %810 = vrsqrt.f32 %v581_v54  ;;  %v573_v59 = vmul.f32 0.03125, %v543_v33 }
 0x215   :  { %v576_v60 = vmul.f32 0.03125, %v552_v57  ;;  %812 = vrsqrt.f32 %v584_v15 }
 0x216   :  { %v589_v25 = vadd.f32 1e-05, %v573_v59 }
 0x217   :  { %v592_v35 = vadd.f32 1e-05, %v576_v60  ;;  %v525_v62 = vpop.xlane.xlu0 %524 }
 0x218   :  { %814 = vrsqrt.f32 %v589_v25  ;;  %v567_v9 = vmul.f32 0.03125, %v525_v62 }
 0x219   :  { %816 = vrsqrt.f32 %v592_v35 }
 0x21a   :  { %v807_v0 = vpop.eup %806  ;;  %v534_v4 = vpop.xlane.xlu1 %533  ;;  %v583_v11 = vadd.f32 1e-05, %v567_v9 }
 0x21b   :  { %v614_v47 = vmul.f32 %v807_v0, %v1190_v23  ;;  %v570_v39 = vmul.f32 0.03125, %v534_v4  ;;  %v549_v40 = vpop.xlane.xlu0 %548 }
 0x21c   :  { %818 = vrsqrt.f32 %v583_v11  ;;  %v575_v56 = vmul.f32 0.03125, %v549_v40 }
 0x21d   :  { %v637_v14 = vmul.f32 %v1285_v5, %v614_v47  ;;  %v586_v16 = vadd.f32 1e-05, %v570_v39 }
 0x21e   :  { %v809_v18 = vpop.eup %808  ;;  %v558_v21 = vpop.xlane.xlu1 %557  ;;  %v591_v23 = vadd.f32 1e-05, %v575_v56 }
 0x21f   :  { %v660_v22 = vadd.f32 %v1291_v1, %v637_v14  ;;  %v622_v24 = vmul.f32 %v809_v18, %v1187_v46  ;;  %820 = vrsqrt.f32 %v586_v16  ;;  %v578_v27 = vmul.f32 0.03125, %v558_v21  ;;  %v531_v29 = vpop.xlane.xlu0 %530 }
 0x220   :  { %822 = vrsqrt.f32 %v591_v23  ;;  %v569_v63 = vmul.f32 0.03125, %v531_v29 }
 0x221   :  { %676 = vst.msk [vmem:[%s1410_s6 + $0x8] sm:$0xff] %vm50_vm0, %v660_v22  ;;  %v645_v30 = vmul.f32 %v1285_v5, %v622_v24  ;;  %v811_v58 = vpop.eup %810  ;;  %v594_v19 = vadd.f32 1e-05, %v578_v27 }
 0x222   :  { %v540_v7 = vpop.xlane.xlu1 %539  ;;  %v813_v37 = vpop.eup %812  ;;  %v613_v46 = vmul.f32 %v811_v58, %v1201_v28  ;;  %v585_v20 = vadd.f32 1e-05, %v569_v63 }
 0x223   :  { %v668_v41 = vadd.f32 %v1291_v1, %v645_v30  ;;  %v572_v26 = vmul.f32 0.03125, %v540_v7  ;;  %v616_v42 = vmul.f32 %v813_v37, %v1198_v32  ;;  %824 = vrsqrt.f32 %v594_v19  ;;  %v555_v13 = vpop.xlane.xlu0 %554 }
 0x224   :  { %v636_v44 = vmul.f32 %v1285_v5, %v613_v46  ;;  %826 = vrsqrt.f32 %v585_v20  ;;  %v577_v45 = vmul.f32 0.03125, %v555_v13 }
 0x225   :  { %684 = vst.msk [vmem:[%s1410_s6 + $0x48] sm:$0xff] %vm50_vm0, %v668_v41  ;;  %v588_v55 = vadd.f32 1e-05, %v572_v26  ;;  %v815_v48 = vpop.eup %814  ;;  %v639_v49 = vmul.f32 %v1285_v5, %v616_v42 }
 0x226   :  { %v564_v28 = vpop.xlane.xlu1 %563  ;;  %v817_v50 = vpop.eup %816  ;;  %v659_v34 = vadd.f32 %v1291_v1, %v636_v44  ;;  %v621_v32 = vmul.f32 %v815_v48, %v1213_v3  ;;  %v593_v51 = vadd.f32 1e-05, %v577_v45 }
 0x227   :  { %828 = vrsqrt.f32 %v588_v55  ;;  %v662_v52 = vadd.f32 %v1291_v1, %v639_v49  ;;  %v624_v53 = vmul.f32 %v817_v50, %v1207_v43  ;;  %v580_v54 = vmul.f32 0.03125, %v564_v28  ;;  %v537_v15 = vpop.xlane.xlu0 %536 }
 0x228   :  { %675 = vst.msk [vmem:[%s1410_s6] sm:$0xff] %vm50_vm0, %v659_v34  ;;  %v644_v33 = vmul.f32 %v1285_v5, %v621_v32  ;;  %830 = vrsqrt.f32 %v593_v51  ;;  %v571_v57 = vmul.f32 0.03125, %v537_v15 }
 0x229   :  { %v819_v59 = vpop.eup %818  ;;  %678 = vst.msk [vmem:[%s1410_s6 + $0x18] sm:$0xff] %vm50_vm0, %v662_v52  ;;  %v647_v3 = vmul.f32 %v1285_v5, %v624_v53  ;;  %v596_v43 = vadd.f32 1e-05, %v580_v54 }
 0x22a   :  { %v667_v60 = vadd.f32 %v1291_v1, %v644_v33  ;;  %v615_v25 = vmul.f32 %v819_v59, %v1219_v10  ;;  %v587_v35 = vadd.f32 1e-05, %v571_v57 }
 0x22b   :  { %v670_v9 = vadd.f32 %v1291_v1, %v647_v3  ;;  %832 = vrsqrt.f32 %v596_v43  ;;  %v561_v0 = vpop.xlane.xlu0 %560 }
 0x22c   :  { %v821_v62 = vpop.eup %820  ;;  %683 = vst.msk [vmem:[%s1410_s6 + $0x40] sm:$0xff] %vm50_vm0, %v667_v60  ;;  %v638_v4 = vmul.f32 %v1285_v5, %v615_v25  ;;  %834 = vrsqrt.f32 %v587_v35  ;;  %v579_v11 = vmul.f32 0.03125, %v561_v0 }
 0x22d   :  { %v618_v47 = vmul.f32 %v821_v62, %v1231_v8  ;;  %v823_v39 = vpop.eup %822  ;;  %686 = vst.msk [vmem:[%s1410_s6 + $0x58] sm:$0xff] %vm50_vm0, %v670_v9 }
 0x22e   :  { %v661_v10 = vadd.f32 %v1291_v1, %v638_v4  ;;  %v623_v14 = vmul.f32 %v823_v39, %v1225_v2  ;;  %v595_v16 = vadd.f32 1e-05, %v579_v11 }
 0x22f   :  { %v641_v40 = vmul.f32 %v1285_v5, %v618_v47 }
 0x230   :  { %v825_v56 = vpop.eup %824  ;;  %677 = vst.msk [vmem:[%s1410_s6 + $0x10] sm:$0xff] %vm50_vm0, %v661_v10  ;;  %v646_v18 = vmul.f32 %v1285_v5, %v623_v14  ;;  %836 = vrsqrt.f32 %v595_v16 }
 0x231   :  { %v664_v8 = vadd.f32 %v1291_v1, %v641_v40  ;;  %v827_v21 = vpop.eup %826  ;;  %v626_v22 = vmul.f32 %v825_v56, %v1242_v6 }
 0x232   :  { %v669_v2 = vadd.f32 %v1291_v1, %v646_v18  ;;  %v617_v24 = vmul.f32 %v827_v21, %v1235_v38 }
 0x233   :  { %680 = vst.msk [vmem:[%s1410_s6 + $0x28] sm:$0xff] %vm50_vm0, %v664_v8  ;;  %v649_v27 = vmul.f32 %v1285_v5, %v626_v22 }
 0x234   :  { %v829_v23 = vpop.eup %828  ;;  %685 = vst.msk [vmem:[%s1410_s6 + $0x50] sm:$0xff] %vm50_vm0, %v669_v2  ;;  %v640_v29 = vmul.f32 %v1285_v5, %v617_v24 }
 0x235   :  { %v620_v6 = vmul.f32 %v829_v23, %v1254_v17  ;;  %v831_v30 = vpop.eup %830  ;;  %v672_v63 = vadd.f32 %v1291_v1, %v649_v27 }
 0x236   :  { %v663_v58 = vadd.f32 %v1291_v1, %v640_v29  ;;  %v625_v38 = vmul.f32 %v831_v30, %v1248_v12 }
 0x237   :  { %v643_v19 = vmul.f32 %v1285_v5, %v620_v6  ;;  %688 = vst.msk [vmem:[%s1410_s6 + $0x68] sm:$0xff] %vm50_vm0, %v672_v63 }
 0x238   :  { %v833_v7 = vpop.eup %832  ;;  %679 = vst.msk [vmem:[%s1410_s6 + $0x20] sm:$0xff] %vm50_vm0, %v663_v58  ;;  %v648_v37 = vmul.f32 %v1285_v5, %v625_v38 }
 0x239   :  { %v666_v17 = vadd.f32 %v1291_v1, %v643_v19  ;;  %v835_v41 = vpop.eup %834  ;;  %v628_v46 = vmul.f32 %v833_v7, %v1266_v31 }
 0x23a   :  { %v671_v12 = vadd.f32 %v1291_v1, %v648_v37  ;;  %v619_v20 = vmul.f32 %v835_v41, %v1259_v61 }
 0x23b   :  { %682 = vst.msk [vmem:[%s1410_s6 + $0x38] sm:$0xff] %vm50_vm0, %v666_v17  ;;  %v651_v26 = vmul.f32 %v1285_v5, %v628_v46 }
 0x23c   :  { %687 = vst.msk [vmem:[%s1410_s6 + $0x60] sm:$0xff] %vm50_vm0, %v671_v12  ;;  %v642_v42 = vmul.f32 %v1285_v5, %v619_v20 }
 0x23d   :  { %v837_v13 = vpop.eup %836  ;;  %v674_v31 = vadd.f32 %v1291_v1, %v651_v26 }
 0x23e   :  { %v665_v44 = vadd.f32 %v1291_v1, %v642_v42  ;;  %v627_v55 = vmul.f32 %v837_v13, %v1270_v36 }
 0x23f   :  { %690 = vst.msk [vmem:[%s1410_s6 + $0x78] sm:$0xff] %vm50_vm0, %v674_v31 }
 0x240   :  { %681 = vst.msk [vmem:[%s1410_s6 + $0x30] sm:$0xff] %vm50_vm0, %v665_v44  ;;  %v650_v61 = vmul.f32 %v1285_v5, %v627_v55 }
 0x242   :  { %v673_v45 = vadd.f32 %v1291_v1, %v650_v61 }
 0x244   :  { %689 = vst.msk [vmem:[%s1410_s6 + $0x70] sm:$0xff] %vm50_vm0, %v673_v45 }

// kernel: transformer_layer.2
= control target key start
LH: loop header
LB: loop body
LE: loop exit
PB: predicated region body
PF: predicated region fallthrough
CT: control target
= control target key end

     0   :  { %s1545_s27 = smov 0   ;;  %s1704_s0 = inlined_call_operand.vmem [shape: f32[2,8,32], index: 0, kind: input, shape index: {}]   ;;  %s1705_s1 = inlined_call_operand.vmem [shape: f32[2,1,8], index: 1, kind: input, shape index: {}]   ;;  %s1706_s2 = inlined_call_operand.vmem [shape: f32[32,32], index: 2, kind: input, shape index: {}]   ;;  %s1707_s3 = inlined_call_operand.vmem [shape: f32[1,32], index: 3, kind: input, shape index: {}]   ;;  %s1708_s4 = inlined_call_operand.vmem [shape: f32[32,32], index: 4, kind: input, shape index: {}]   ;;  %s1709_s5 = inlined_call_operand.vmem [shape: f32[1,32], index: 5, kind: input, shape index: {}]   ;;  %s1710_s6 = inlined_call_operand.vmem [shape: f32[32,32], index: 6, kind: input, shape index: {}]   ;;  %s1711_s7 = inlined_call_operand.vmem [shape: f32[1,32], index: 7, kind: input, shape index: {}]   ;;  %s1712_s8 = inlined_call_operand.vmem [shape: f32[2,8,32], index: 8, kind: output, shape index: {}]  }
   0x1 LB: > { %s1319_s28 = sadd.s32 4294967295, %s1489_s27   ;;  %p1323_p0 = scmp.ge.s32.totalorder %s1489_s27, 1  ;;  %s1489_s27 = sphi %s1545_s27, %s18_s27  }
   0x2   : > { %p269_p1 = scmp.lt.s32.totalorder %s1489_s27, 3 }
   0x4   : > { %p270_p2 = pnand %p1323_p0, %p269_p1 }
   0x5   : > { %p304_p3 = scmp.lt.s32.totalorder (!%p270_p2), %s1319_s28, 1  ;;  %s1493_s20 = smov (!%p270_p2), 112  }
   0x6   : > { %273 = sbr.rel (%p270_p2) target bundleno = 1163 (0x48b), region = 52  ;;  %s1494_s21 = smov (!%p270_p2), 120  }
   0x7   : > { %s1495_s22 = smov (!%p270_p2), 104   ;;  %s1497_s30 = smov (!%p270_p2), 8  }
   0x8   : > { %s1498_s9 = smov (!%p270_p2), 16   ;;  %s1499_s10 = smov (!%p270_p2), 24  }
   0xb   : > { %v406_v0 = vld [vmem:[%s1708_s4 + $0x18] sm:$0xff]  ;;  %v1491_v2 = vmov 0.0   ;;  %v405_v3 = vld [vmem:[%s1708_s4 + $0x10] sm:$0xff]  ;;  %s1714_s28 = smov (!%p304_p3, %s1319_s28), 1  ;;  %v404_v5 = vld [vmem:[%s1708_s4 + $0x8] sm:$0xff]  ;;  %vm328_vm0 = vcmask 261120   ;;  %v647_v35 = vlaneseq }
   0xc   : > { %v320_v1 = vld [vmem:[%s1706_s2 + $0x18] sm:$0xff]  ;;  %1388 = vmatprep.subr.mxu1 %v1491_v2  ;;  %1377 = vmatprep.subr.mxu0 %v1491_v2  ;;  %v319_v4 = vld [vmem:[%s1706_s2 + $0x10] sm:$0xff]  ;;  %v318_v6 = vld [vmem:[%s1706_s2 + $0x8] sm:$0xff]  ;;  %s1324_s19 = sshll.u32 %s1714_s28, 3  ;;  %vm1492_vm1 = vmmov 0   ;;  %vm567_vm2 = vcmask 64512   ;;  %s310_s29 = scalar_lea.vmem %s1705_s1, %s1714_s28 }
   0xd   : > { %1389 = vmatpush3.msra.mxu1 %v406_v0  ;;  %1378 = vmatpush3.msra.mxu0 %v320_v1  ;;  %v403_v7 = vld [vmem:[%s1708_s4] sm:$0xff]  ;;  %s307_s24 = scalar_lea.vmem %s1704_s0, %s1324_s19  ;;  %v488_v10 = vld [vmem:[%s1710_s6 + $0x18] sm:$0xff]  ;;  %v487_v11 = vld [vmem:[%s1710_s6 + $0x10] sm:$0xff]  ;;  %v648_v37 = vshrl.u32 %v647_v35, 7  ;;  %v1496_v39 = vmov 0   ;;  %vm1252_vm5 = vcmask 130048   ;;  %s314_s13 = scalar_lea.vmem %s1712_s8, %s1324_s19 }
   0xe   : > { %1390 = vmatprep.subr.mxu1 %v1491_v2  ;;  %1379 = vmatprep.subr.mxu0 %v1491_v2  ;;  %v315_v8 = vld [vmem:[%s307_s24] sm:$0xff]  ;;  %v486_v12 = vld [vmem:[%s1710_s6 + $0x8] sm:$0xff]  ;;  %vm1254_vm6 = vcmask 195584  }
   0xf   : > { %1391 = vmatpush3.msra.mxu1 %v405_v3  ;;  %1380 = vmatpush3.msra.mxu0 %v319_v4  ;;  %v317_v9 = vld [vmem:[%s1706_s2] sm:$0xff]  ;;  %v649_v38 = vsub.s32 0, %v648_v37 }
  0x10   : > { %1392 = vmatprep.subr.mxu1 %v1491_v2  ;;  %1381 = vmatprep.subr.mxu0 %v1491_v2  ;;  %v485_v13 = vld [vmem:[%s1710_s6] sm:$0xff] }
  0x11   : > { %1393 = vmatpush3.msra.mxu1 %v404_v5  ;;  %1382 = vmatpush3.msra.mxu0 %v318_v6  ;;  %v1328_v14 = vld [vmem:[%s1709_s5] ss:$0 sm:$0xff] }
  0x12   : > { %1394 = vmatprep.subr.mxu1 %v1491_v2  ;;  %1396 = vmatprep.mubr.msk.f32.mxu1 %vm1492_vm1, %v1491_v2  ;;  %v1326_v16 = vld [vmem:[%s1707_s3] ss:$0 sm:$0xff] }
  0x13   : > { %1395 = vmatpush3.msra.mxu1 %v403_v7  ;;  %1383 = vmatprep.subr.mxu0 %v1491_v2  ;;  %v1330_v24 = vld [vmem:[%s1711_s7] ss:$0 sm:$0xff] }
  0x14   : > { %1397 = vmatmul.mubr.msk.f32.vlgmr.msra.gmra.mxu1 %vm328_vm0, %v315_v8  ;;  %1384 = vmatpush3.msra.mxu0 %v317_v9  ;;  %v316_v36 = vld [vmem:[%s310_s29] sm:$0x1] }
  0x15   : > { %1385 = vmatprep.mubr.msk.f32.mxu0 %vm1492_vm1, %v1491_v2  ;;  %1410 = vmatprep.subr.mxu1 %v1491_v2  ;;  %vm645_vm3 = vcmp.lt.f32.partialorder %v316_v36, 0.5 }
  0x16   : > { %1386 = vmatmul.mubr.msk.f32.vlgmr.msra.gmra.mxu0 %vm328_vm0, %v315_v8  ;;  %1412 = vmatprep.mubr.msk.f32.mxu1 %vm1492_vm1, %v1491_v2  ;;  %v646_v40 = vsel %vm645_vm3, 1, %v1496_v39 }
  0x17   : > { %1399 = vmatprep.subr.mxu0 %v1491_v2  ;;  %1407 = vmatprep.mubr.msk.f32.mxu0 %vm1492_vm1, %v1491_v2  ;;  %v650_v41 = vrot.slane %v646_v40, %v649_v38 }
  0x18   : > { %1400 = vmatpush3.msra.mxu0 %v488_v10 }
  0x19   : > { %1401 = vmatprep.subr.mxu0 %v1491_v2  ;;  %vm651_vm4 = vcmp.eq.s32.totalorder %v650_v41, 1 }
  0x1a   : > { %1402 = vmatpush3.msra.mxu0 %v487_v11 }
  0x1b   : > { %1403 = vmatprep.subr.mxu0 %v1491_v2 }
  0x1c   : > { %1404 = vmatpush3.msra.mxu0 %v486_v12 }
  0x1d   : > { %1405 = vmatprep.subr.mxu0 %v1491_v2 }
  0x1e   : > { %1406 = vmatpush3.msra.mxu0 %v485_v13 }
  0x1f   : > { %1408 = vmatmul.mubr.msk.f32.vlgmr.msra.gmra.mxu0 %vm328_vm0, %v315_v8  ;;  %1420 = vmatprep.subr.mxu0 %v1491_v2 }
  0x20   : > { %1422 = vmatprep.mubr.msk.f32.mxu0 %vm1492_vm1, %v1491_v2 }
  0xd4   : > { %v480_v15 = vpop.f32.mrf.mxu1 }
  0xd5   : > { %v481_v17 = vadd.f32 %v1328_v14, %v480_v15 }
  0xd6   : > { %v398_v18 = vpop.f32.mrf.mxu0  ;;  %v1398_v19 = vpop.f32.mrf.mxu1 }
  0xd7   : > { %v484_v20 = vmax.f32 %v481_v17, 0.0  ;;  %v399_v21 = vadd.f32 %v1326_v16, %v398_v18 }
  0xd8   : > { %v1387_v22 = vpop.f32.mrf.mxu0 }
  0xd9   : > { %v402_v23 = vmax.f32 %v399_v21, 0.0  ;;  %907 = vrot.lane.b32.xlu1 %v484_v20, %s1493_s20  ;;  %739 = vrot.lane.b32.xlu0 %v484_v20, %s1494_s21 }
  0xda   : > { %1411 = vmatpush3.xpose.msk.msra.mxu1 %vm567_vm2, %v484_v20 }
  0xdb   : > { %1415 = vmatprep.subr.mxu1 %v1491_v2 }
  0xdd   : > { %1413 = vmatmul.mubr.msk.f32.vlgmr.msra.gmra.mxu1 %vm567_vm2, %v402_v23  ;;  %905 = vrot.lane.b32.xlu1 %v402_v23, %s1493_s20 }
  0xde   : > { %737 = vrot.lane.b32.xlu0 %v402_v23, %s1494_s21  ;;  %1417 = vmatprep.mubr.msk.f32.mxu1 %vm1492_vm1, %v1491_v2 }
  0xdf   : > { %v562_v25 = vpop.f32.mrf.mxu0 }
  0xe0   : > { %v563_v26 = vadd.f32 %v1330_v24, %v562_v25 }
  0xe1   : > { %1072 = vrot.lane.b32.xlu1 %v402_v23, %s1495_s22  ;;  %v1409_v27 = vpop.f32.mrf.mxu0 }
  0xe2   : > { %1074 = vrot.lane.b32.xlu0 %v484_v20, %s1495_s22  ;;  %v1644_v28 = vmax.f32 %v563_v26, 0.0 }
  0xe4   : > { %1416 = vmatpush3.msra.mxu1 %v1644_v28 }
  0xe5   : > { %1425 = vmatprep.subr.mxu1 %v1491_v2 }
 0x14b   : > { %v740_v29 = vpop.permute.xlu0 %739  ;;  %v908_v30 = vpop.permute.xlu1 %907 }
 0x14c   : > { %1421 = vmatpush3.xpose.msk.msra.mxu0 %vm567_vm2, %v740_v29 }
 0x14d   : > { %1430 = vmatprep.subr.mxu0 %v1491_v2 }
 0x14f   : > { %v906_v32 = vpop.permute.xlu1 %905 }
 0x150   : > { %v738_v31 = vpop.permute.xlu0 %737 }
 0x151   : > { %1423 = vmatmul.mubr.msk.f32.vlgmr.msra.gmra.mxu0 %vm567_vm2, %v738_v31 }
 0x152   : > { %1431 = vmatpush3.xpose.msk.msra.mxu0 %vm567_vm2, %v908_v30  ;;  %1432 = vmatprep.mubr.msk.f32.mxu0 %vm1492_vm1, %v1491_v2 }
 0x153   : > { %1440 = vmatprep.subr.mxu0 %v1491_v2  ;;  %v1073_v34 = vpop.permute.xlu1 %1072 }
 0x154   : > { %v1075_v33 = vpop.permute.xlu0 %1074 }
 0x155   : > { %1433 = vmatmul.mubr.msk.f32.vlgmr.msra.gmra.mxu0 %vm567_vm2, %v906_v32 }
 0x156   : > { %1441 = vmatpush3.xpose.msk.msra.mxu0 %vm567_vm2, %v1075_v33  ;;  %1442 = vmatprep.mubr.msk.f32.mxu0 %vm1492_vm1, %v1491_v2 }
 0x159   : > { %1443 = vmatmul.mubr.msk.f32.vlgmr.msra.gmra.mxu0 %vm567_vm2, %v1073_v34 }
 0x19d   : > { %v640_v42 = vpop.f32.mrf.mxu1 }
 0x19e   : > { %v644_v43 = vmul.f32 0.35355338, %v640_v42 }
 0x19f   : > { %v1414_v44 = vpop.f32.mrf.mxu1 }
 0x1a0   : > { %v652_v45 = vsel %vm651_vm4, -1e+09, %v644_v43 }
 0x1a1   : > { %v653_v46 = vsel %vm567_vm2, %v652_v45, -inf }
 0x1a2   : > { %654 = vmax.xlane.f32.xlu0 %v653_v46 }
 0x211   : > { %v811_v47 = vpop.f32.mrf.mxu0 }
 0x212   : > { %v815_v48 = vmul.f32 0.35355338, %v811_v47 }
 0x213   : > { %v1424_v49 = vpop.f32.mrf.mxu0 }
 0x214   : > { %v816_v50 = vsel %vm651_vm4, -1e+09, %v815_v48 }
 0x215   : > { %v979_v51 = vpop.f32.mrf.mxu0  ;;  %v817_v52 = vsel %vm567_vm2, %v816_v50, -inf }
 0x216   : > { %v983_v53 = vmul.f32 0.35355338, %v979_v51  ;;  %818 = vmax.xlane.f32.xlu1 %v817_v52 }
 0x217   : > { %v1434_v54 = vpop.f32.mrf.mxu0 }
 0x218   : > { %v984_v55 = vsel %vm651_vm4, -1e+09, %v983_v53 }
 0x219   : > { %v1146_v56 = vpop.f32.mrf.mxu0  ;;  %v985_v57 = vsel %vm567_vm2, %v984_v55, -inf }
 0x21a   : > { %v1150_v58 = vmul.f32 0.35355338, %v1146_v56  ;;  %986 = vmax.xlane.f32.xlu0 %v985_v57 }
 0x21b   : > { %v1444_v59 = vpop.f32.mrf.mxu0 }
 0x21c   : > { %v1151_v60 = vsel %vm651_vm4, -1e+09, %v1150_v58 }
 0x21d   : > { %v1152_v61 = vsel %vm567_vm2, %v1151_v60, -inf }
 0x21e   : > { %1153 = vmax.xlane.f32.xlu0 %v1152_v61 }
 0x227   : > { %829 = vrot.lane.b32.xlu1 %v1644_v28, %s1494_s21 }
 0x22b   : > { %v655_v62 = vpop.xlane.xlu0 %654 }
 0x22c   : > { %v656_v63 = vsub.f32 %v652_v45, %v655_v62 }
 0x22e   : > { %v657_v0 = vmul.f32 1.442695, %v656_v63 }
 0x230   : > { %1467 = vpow2.f32 %v657_v0 }
 0x23d   : > { %v1468_v1 = vpop.eup %1467 }
 0x23e   : > { %v659_v3 = vsel %vm567_vm2, %v1468_v1, 0.0 }
 0x24b   : > { %660 = vadd.xlane.f32.xlu1 %v659_v3 }
 0x29f   : > { %v819_v4 = vpop.xlane.xlu1 %818 }
 0x2a0   : > { %v820_v5 = vsub.f32 %v816_v50, %v819_v4 }
 0x2a2   : > { %v821_v6 = vmul.f32 1.442695, %v820_v5 }
 0x2a3   : > { %v987_v7 = vpop.xlane.xlu0 %986  ;;  %v830_v19 = vpop.permute.xlu1 %829 }
 0x2a4   : > { %1469 = vpow2.f32 %v821_v6  ;;  %v988_v8 = vsub.f32 %v984_v55, %v987_v7 }
 0x2a6   : > { %v989_v9 = vmul.f32 1.442695, %v988_v8 }
 0x2a7   : > { %v1154_v10 = vpop.xlane.xlu0 %1153 }
 0x2a8   : > { %1471 = vpow2.f32 %v989_v9  ;;  %v1155_v11 = vsub.f32 %v1151_v60, %v1154_v10 }
 0x2aa   : > { %v1156_v12 = vmul.f32 1.442695, %v1155_v11 }
 0x2ac   : > { %1473 = vpow2.f32 %v1156_v12 }
 0x2b1   : > { %v1470_v13 = vpop.eup %1469 }
 0x2b2   : > { %v823_v14 = vsel %vm567_vm2, %v1470_v13, 0.0 }
 0x2b3   : > { %824 = vadd.xlane.f32.xlu0 %v823_v14 }
 0x2b5   : > { %v1472_v15 = vpop.eup %1471 }
 0x2b6   : > { %v991_v16 = vsel %vm567_vm2, %v1472_v15, 0.0 }
 0x2b7   : > { %992 = vadd.xlane.f32.xlu1 %v991_v16 }
 0x2b9   : > { %v1474_v17 = vpop.eup %1473 }
 0x2ba   : > { %v1158_v18 = vsel %vm567_vm2, %v1474_v17, 0.0 }
 0x2bb   : > { %1159 = vadd.xlane.f32.xlu0 %v1158_v18 }
 0x2c8   : > { %1163 = vrot.lane.b32.xlu1 %v1644_v28, %s1495_s22 }
 0x2d1   : > { %996 = vrot.lane.b32.xlu0 %v1644_v28, %s1493_s20 }
 0x2d4   : > { %v661_v20 = vpop.xlane.xlu1 %660 }
 0x2d5   : > { %1475 = vrcp.f32 %v661_v20 }
 0x2e2   : > { %v1476_v21 = vpop.eup %1475 }
 0x2e3   : > { %v663_v22 = vmul.f32 %v1476_v21, %v1468_v1 }
 0x2e5   : > { %1418 = vmatmul.mubr.msk.f32.vlgmr.msra.gmra.mxu1 %vm567_vm2, %v663_v22 }
 0x2e6   : > { %1426 = vmatpush3.msra.mxu1 %v830_v19  ;;  %1427 = vmatprep.mubr.msk.f32.mxu1 %vm1492_vm1, %v1491_v2 }
 0x2e7   : > { %1435 = vmatprep.subr.mxu1 %v1491_v2 }
 0x33c   : > { %v825_v23 = vpop.xlane.xlu0 %824 }
 0x33d   : > { %1477 = vrcp.f32 %v825_v23 }
 0x340   : > { %v993_v24 = vpop.xlane.xlu1 %992 }
 0x341   : > { %1479 = vrcp.f32 %v993_v24 }
 0x344   : > { %v1160_v25 = vpop.xlane.xlu0 %1159  ;;  %v1164_v31 = vpop.permute.xlu1 %1163 }
 0x345   : > { %1481 = vrcp.f32 %v1160_v25 }
 0x348   : > { %v997_v28 = vpop.permute.xlu0 %996 }
 0x34a   : > { %v1478_v26 = vpop.eup %1477 }
 0x34b   : > { %v827_v27 = vmul.f32 %v1478_v26, %v1470_v13 }
 0x34d   : > { %1428 = vmatmul.mubr.msk.f32.vlgmr.msra.gmra.mxu1 %vm567_vm2, %v827_v27 }
 0x34e   : > { %v1480_v29 = vpop.eup %1479  ;;  %1436 = vmatpush3.msra.mxu1 %v997_v28  ;;  %1437 = vmatprep.mubr.msk.f32.mxu1 %vm1492_vm1, %v1491_v2 }
 0x34f   : > { %1445 = vmatprep.subr.mxu1 %v1491_v2  ;;  %v995_v30 = vmul.f32 %v1480_v29, %v1472_v15 }
 0x351   : > { %1438 = vmatmul.mubr.msk.f32.vlgmr.msra.gmra.mxu1 %vm567_vm2, %v995_v30 }
 0x352   : > { %v1482_v32 = vpop.eup %1481  ;;  %1446 = vmatpush3.msra.mxu1 %v1164_v31  ;;  %1447 = vmatprep.mubr.msk.f32.mxu1 %vm1492_vm1, %v1491_v2 }
 0x353   : > { %v1162_v33 = vmul.f32 %v1482_v32, %v1474_v17 }
 0x355   : > { %1448 = vmatmul.mubr.msk.f32.vlgmr.msra.gmra.mxu1 %vm567_vm2, %v1162_v33 }
 0x3a5   : > { %v733_v34 = vpop.f32.mrf.mxu1 }
 0x3a7   : > { %v1419_v35 = vpop.f32.mrf.mxu1 }
 0x40d   : > { %v901_v36 = vpop.f32.mrf.mxu1 }
 0x40e   : > { %1240 = vrot.lane.b32.xlu1 %v901_v36, %s1497_s30 }
 0x40f   : > { %v1429_v37 = vpop.f32.mrf.mxu1 }
 0x411   : > { %v1068_v38 = vpop.f32.mrf.mxu1 }
 0x412   : > { %1244 = vrot.lane.b32.xlu0 %v1068_v38, %s1498_s9 }
 0x413   : > { %v1439_v39 = vpop.f32.mrf.mxu1 }
 0x415   : > { %v1235_v40 = vpop.f32.mrf.mxu1 }
 0x416   : > { %1248 = vrot.lane.b32.xlu1 %v1235_v40, %s1499_s10 }
 0x417   : > { %v1449_v41 = vpop.f32.mrf.mxu1 }
 0x480   : > { %v1241_v42 = vpop.permute.xlu1 %1240 }
 0x481   : > { %v1251_v43 = vsel %vm567_vm2, %v733_v34, %v1241_v42 }
 0x484   : > { %v1245_v2 = vpop.permute.xlu0 %1244 }
 0x485   : > { %v1253_v44 = vsel %vm1252_vm5, %v1251_v43, %v1245_v2 }
 0x488   : > { %v1249_v45 = vpop.permute.xlu1 %1248 }
 0x489   : > { %v1255_v46 = vsel %vm1254_vm6, %v1253_v44, %v1249_v45 }
 0x48a   : > { %1256 = vst.msk [vmem:[%s314_s13] sm:$0xff] %vm328_vm0, %v1255_v46 }
 0x48b PF: > { %s18_s27 = sadd.s32 1, %s1489_s27  }
 0x48c   : > { %p15_p4 = scmp.ge.s32.totalorder %s18_s27, 4  }
 0x48e   :  { %17 = sbr.rel (!%p15_p4) target bundleno = 1 (0x1), region = 85 }

</bundles_post_ra>
